<compile_context>
chip_gen: v7x
topology: tpu7x:2x2x1
jax: 0.10.0
libtpu: 0.0.40
codegen_flags: <defaults>
</compile_context>

<pallas_src>
import functools

import jax
import jax.numpy as jnp
from jax import lax
from jax.experimental import pallas as pl
from jax.experimental.pallas import tpu as pltpu


# ----------------------------------------------------------------------------
# Gate layout: [i, f, o, g] along the 4H axis (reordered from PyTorch at init).
#   sigmoid( z[:, :3H] ) -> i, f, o      tanh( z[:, 3H:] ) -> g
# ----------------------------------------------------------------------------


def _lstm_mid_kernel(x_ref, w_ih_ref, w_hh_ref, b_ref, out_ref, zx_sc, *, unroll):
    T, bb, D_in = x_ref.shape
    H = w_hh_ref.shape[0]

    # Hoisted, bias-folded input projection for ALL timesteps: one big bf16 MXU matmul.
    x_all = x_ref[...].reshape(T * bb, D_in).astype(jnp.bfloat16)
    zx = jnp.dot(x_all, w_ih_ref[...], preferred_element_type=jnp.float32) + b_ref[...]
    zx_sc[...] = zx.reshape(T, bb, 4 * H).astype(zx_sc.dtype)     # bf16 scratch (bounds VMEM)

    w_hh = w_hh_ref[...]                                          # (H, 4H) bf16, loop resident

    def step(t, carry):
        h, c = carry                                              # f32 (bb, H)
        z = zx_sc[t].astype(jnp.float32) + jnp.dot(
            h.astype(jnp.bfloat16), w_hh, preferred_element_type=jnp.float32)
        sig = jax.nn.sigmoid(z[:, :3 * H])                        # one EUP pass: i, f, o
        i_g = sig[:, 0 * H:1 * H]
        f_g = sig[:, 1 * H:2 * H]
        o_g = sig[:, 2 * H:3 * H]
        g_g = jnp.tanh(z[:, 3 * H:4 * H])                         # one EUP pass: g
        c_new = f_g * c + i_g * g_g
        h_new = o_g * jnp.tanh(c_new)
        out_ref[t] = h_new.astype(out_ref.dtype)                  # bf16 sequence for next layer
        return h_new, c_new

    h0 = jnp.zeros((bb, H), jnp.float32)
    c0 = jnp.zeros((bb, H), jnp.float32)
    lax.fori_loop(0, T, step, (h0, c0), unroll=unroll)


def lstm_mid_layer(x_tbd, w_ih_t, w_hh_t, bias, *, batch_block):
    """x_tbd: (T, Bp, D_in) time-major bf16; weights pre-transposed bf16; returns (T, Bp, H) bf16."""
    T, Bp, D_in = x_tbd.shape
    H = w_hh_t.shape[0]
    bb = batch_block
    assert Bp % bb == 0
    unroll = True if T <= 32 else 8
    kernel = functools.partial(_lstm_mid_kernel, unroll=unroll)
    return pl.pallas_call(
        kernel,
        out_shape=jax.ShapeDtypeStruct((T, Bp, H), jnp.bfloat16),
        grid=(Bp // bb,),
        in_specs=[
            pl.BlockSpec((T, bb, D_in), lambda b: (0, b, 0)),
            pl.BlockSpec((D_in, 4 * H), lambda b: (0, 0)),      # constant index: not re-DMAed
            pl.BlockSpec((H, 4 * H), lambda b: (0, 0)),
            pl.BlockSpec((1, 4 * H), lambda b: (0, 0)),
        ],
        out_specs=pl.BlockSpec((T, bb, H), lambda b: (0, b, 0)),
        scratch_shapes=[pltpu.VMEM((T, bb, 4 * H), jnp.bfloat16)],
        compiler_params=pltpu.CompilerParams(dimension_semantics=("parallel",)),
    )(x_tbd, w_ih_t, w_hh_t, bias)


# ----------------------------------------------------------------------------
# Last LSTM layer with the Linear prediction head fused into the time loop
# (VPU multiply-accumulate over the full H width, single lane reduce at the end).
# ----------------------------------------------------------------------------
def _lstm_last_kernel(x_ref, w_ih_ref, w_hh_ref, b_ref, w_pred_ref, b_pred_ref,
                      out_ref, zx_sc, *, unroll):
    T, bb, D_in = x_ref.shape
    H = w_hh_ref.shape[0]

    x_all = x_ref[...].reshape(T * bb, D_in).astype(jnp.bfloat16)
    zx = jnp.dot(x_all, w_ih_ref[...], preferred_element_type=jnp.float32) + b_ref[...]
    zx_sc[...] = zx.reshape(T, bb, 4 * H).astype(zx_sc.dtype)

    w_hh = w_hh_ref[...]

    def step(t, carry):
        h, c, acc = carry                                         # acc: f32 (bb, H)
        z = zx_sc[t].astype(jnp.float32) + jnp.dot(
            h.astype(jnp.bfloat16), w_hh, preferred_element_type=jnp.float32)
        sig = jax.nn.sigmoid(z[:, :3 * H])
        i_g = sig[:, 0 * H:1 * H]
        f_g = sig[:, 1 * H:2 * H]
        o_g = sig[:, 2 * H:3 * H]
        g_g = jnp.tanh(z[:, 3 * H:4 * H])
        c_new = f_g * c + i_g * g_g
        h_new = o_g * jnp.tanh(c_new)
        # Fused head: same math as lstm_out.reshape(B,-1) @ W_pred^T, but accumulated as a
        # full-width VPU product (no per-step N=1 MXU matvec, no 1-lane accumulator).
        acc = acc + h_new * w_pred_ref[t]                         # (bb,H) * (1,H) broadcast, f32
        return h_new, c_new, acc

    h0 = jnp.zeros((bb, H), jnp.float32)
    c0 = jnp.zeros((bb, H), jnp.float32)
    a0 = jnp.zeros((bb, H), jnp.float32)
    _, _, acc = lax.fori_loop(0, T, step, (h0, c0, a0), unroll=unroll)
    out_ref[...] = jnp.sum(acc, axis=-1, keepdims=True) + b_pred_ref[...]   # one lane reduce


def lstm_last_layer(x_tbd, w_ih_t, w_hh_t, bias, w_pred, b_pred, *, batch_block):
    """x_tbd: (T, Bp, D_in) bf16; w_pred: (T, 1, H) f32; returns fused prediction (Bp, 1) f32."""
    T, Bp, D_in = x_tbd.shape
    H = w_hh_t.shape[0]
    bb = batch_block
    assert Bp % bb == 0
    unroll = True if T <= 32 else 8
    kernel = functools.partial(_lstm_last_kernel, unroll=unroll)
    return pl.pallas_call(
        kernel,
        out_shape=jax.ShapeDtypeStruct((Bp, 1), jnp.float32),
        grid=(Bp // bb,),
        in_specs=[
            pl.BlockSpec((T, bb, D_in), lambda b: (0, b, 0)),
            pl.BlockSpec((D_in, 4 * H), lambda b: (0, 0)),
            pl.BlockSpec((H, 4 * H), lambda b: (0, 0)),
            pl.BlockSpec((1, 4 * H), lambda b: (0, 0)),
            pl.BlockSpec((T, 1, H), lambda b: (0, 0, 0)),
            pl.BlockSpec((1, 1), lambda b: (0, 0)),
        ],
        out_specs=pl.BlockSpec((bb, 1), lambda b: (b, 0)),
        scratch_shapes=[pltpu.VMEM((T, bb, 4 * H), jnp.bfloat16)],
        compiler_params=pltpu.CompilerParams(dimension_semantics=("parallel",)),
    )(x_tbd, w_ih_t, w_hh_t, bias, w_pred, b_pred)


# ----------------------------------------------------------------------------
# Full model forward (mirrors LSTMModel.forward)
# ----------------------------------------------------------------------------
def lstm_model_forward(inputs, params, labels=None):
    """inputs: (B, T, input_size) batch_first, like PyTorch."""
    B, T, _ = inputs.shape
    Bp = -(-B // 8) * 8                       # sublane-tile padding
    if Bp > 8:
        Bp = -(-Bp // 16) * 16                # allow a 2-way 'parallel' batch split (v7x megacore)
    bb = Bp if Bp <= 8 else Bp // 2           # per-core batch block

    # Single transpose of the raw input to time-major + one bf16 cast; all later activations
    # stay time-major bf16 and the head is fused, so no per-layer swapaxes/reshape/convert.
    x = jnp.swapaxes(inputs, 0, 1)                        # (T, B, I)
    if Bp != B:
        x = jnp.pad(x, ((0, 0), (0, Bp - B), (0, 0)))     # (T, Bp, I)
    x = x.astype(jnp.bfloat16)

    h = x
    for (w_ih_t, w_hh_t, bias) in params["lstm"][:-1]:    # weights already bf16 (pre-cast at init)
        h = lstm_mid_layer(h, w_ih_t, w_hh_t, bias, batch_block=bb)

    w_ih_t, w_hh_t, bias = params["lstm"][-1]
    pred_padded = lstm_last_layer(h, w_ih_t, w_hh_t, bias,
                                  params["pred_w"], params["pred_b"], batch_block=bb)
    prediction = pred_padded[:B]                          # (B, 1); padded rows are independent

    output = {"prediction": prediction}
    if labels is not None:
        # MSE loss (tiny scalar reduction) kept in plain-JAX glue.
        diff = prediction.squeeze() - labels
        output["loss"] = jnp.mean(diff * diff)
    return output


# ----------------------------------------------------------------------------
# Deterministic parameter init (PyTorch-style U(-1/sqrt(H), 1/sqrt(H))).
# Gates are reordered [i,f,g,o] -> [i,f,o,g]; weights pre-transposed; biases pre-summed;
# bf16 compute copies made once (f32 masters kept for the reference).
# ----------------------------------------------------------------------------
def _reorder_gates(w4h):
    """Reorder the leading 4H axis from [i|f|g|o] to [i|f|o|g]."""
    H = w4h.shape[0] // 4
    return jnp.concatenate([w4h[:2 * H], w4h[3 * H:], w4h[2 * H:3 * H]], axis=0)


def init_params(key, input_size, hidden_size, num_layers, sequence_length):
    lstm_bf16, lstm_f32 = [], []
    bound = 1.0 / jnp.sqrt(hidden_size)
    d_in = input_size
    for _ in range(num_layers):
        key, k1, k2, k3, k4 = jax.random.split(key, 5)
        w_ih = jax.random.uniform(k1, (4 * hidden_size, d_in), jnp.float32, -bound, bound)
        w_hh = jax.random.uniform(k2, (4 * hidden_size, hidden_size), jnp.float32, -bound, bound)
        b_ih = jax.random.uniform(k3, (4 * hidden_size,), jnp.float32, -bound, bound)
        b_hh = jax.random.uniform(k4, (4 * hidden_size,), jnp.float32, -bound, bound)
        w_ih_t = _reorder_gates(w_ih).T                       # (d_in, 4H), [i|f|o|g]
        w_hh_t = _reorder_gates(w_hh).T                       # (H, 4H)
        bias = _reorder_gates(b_ih + b_hh)[None, :]           # (1, 4H), biases pre-summed
        lstm_f32.append((w_ih_t, w_hh_t, bias))
        lstm_bf16.append((w_ih_t.astype(jnp.bfloat16), w_hh_t.astype(jnp.bfloat16), bias))
        d_in = hidden_size

    feat = hidden_size * sequence_length
    pbound = 1.0 / jnp.sqrt(feat)
    key, k5, k6 = jax.random.split(key, 3)
    pw = jax.random.uniform(k5, (1, feat), jnp.float32, -pbound, pbound)
    pb = jax.random.uniform(k6, (1,), jnp.float32, -pbound, pbound)
    return {
        "lstm": lstm_bf16,                                    # bf16 compute copies (cast once)
        "lstm_f32": lstm_f32,                                 # f32 masters (reference / training)
        "pred_w": pw.reshape(sequence_length, 1, hidden_size),  # (T, 1, H) VPU-friendly layout
        "pred_b": pb[None, :],                                # (1, 1)
    }


# ----------------------------------------------------------------------------
# Pure-JAX reference (consumes the [i,f,o,g]-reordered weights).
#   emulate_kernel=False -> exact f32 LSTM semantics (same math as torch.nn.LSTM).
#   emulate_kernel=True  -> mirrors the kernel's bf16-MXU / bf16-zx path (f32 accumulate).
# ----------------------------------------------------------------------------
def reference_forward(inputs, params, labels=None, emulate_kernel=False):
    B, T, _ = inputs.shape
    weights = params["lstm"] if emulate_kernel else params["lstm_f32"]
    x_seq = inputs.astype(jnp.bfloat16) if emulate_kernel else inputs
    last_hs_f32 = None
    for (w_ih_t, w_hh_t, bias) in weights:
        H = w_hh_t.shape[0]
        zx = jnp.einsum("btd,dk->btk", x_seq, w_ih_t,
                        preferred_element_type=jnp.float32) + bias[0]
        if emulate_kernel:
            zx = zx.astype(jnp.bfloat16).astype(jnp.float32)

        def step(carry, zx_t, w_hh_t=w_hh_t, H=H):
            h, c = carry
            hm = h.astype(jnp.bfloat16) if emulate_kernel else h
            z = zx_t + jnp.dot(hm, w_hh_t, preferred_element_type=jnp.float32)
            sig = jax.nn.sigmoid(z[:, :3 * H])
            i, f, o = sig[:, :H], sig[:, H:2 * H], sig[:, 2 * H:]
            g = jnp.tanh(z[:, 3 * H:])
            c = f * c + i * g
            h = o * jnp.tanh(c)
            return (h, c), h

        init = (jnp.zeros((B, H), jnp.float32), jnp.zeros((B, H), jnp.float32))
        _, hs = lax.scan(step, init, jnp.swapaxes(zx, 0, 1))   # (T, B, H) f32
        last_hs_f32 = hs
        x_seq = jnp.swapaxes(hs, 0, 1)
        if emulate_kernel:
            x_seq = x_seq.astype(jnp.bfloat16)

    flat = jnp.swapaxes(last_hs_f32, 0, 1).reshape(B, -1)       # (B, T*H)
    prediction = flat @ params["pred_w"].reshape(-1, 1) + params["pred_b"]
    out = {"prediction": prediction}
    if labels is not None:
        diff = prediction.squeeze() - labels
        out["loss"] = jnp.mean(diff * diff)
    return out


if __name__ == "__main__":
    # Small, forward-consistent shapes: batch=2, seq=8, input=16, hidden=32, layers=2.
    B, T, I, H, L = 2, 8, 16, 32, 2

    key = jax.random.PRNGKey(0)
    kx, kl, kp = jax.random.split(key, 3)
    inputs = jax.random.normal(kx, (B, T, I), jnp.float32)
    labels = jax.random.normal(kl, (B,), jnp.float32)
    params = init_params(kp, input_size=I, hidden_size=H, num_layers=L, sequence_length=T)

    out = jax.jit(lstm_model_forward)(inputs, params, labels)
    jax.block_until_ready(out["prediction"])
    jax.block_until_ready(out["loss"])

    # Tight check vs a reference that emulates the kernel's bf16 MXU / bf16-zx path.
    ref_bf16 = reference_forward(inputs, params, labels, emulate_kernel=True)
    assert jnp.allclose(out["prediction"], ref_bf16["prediction"], atol=5e-3, rtol=5e-3)
    assert jnp.allclose(out["loss"], ref_bf16["loss"], atol=5e-3, rtol=5e-3)

    # Loose check vs the exact-f32 module semantics (bounds bf16 quantization effect).
    ref_f32 = reference_forward(inputs, params, labels, emulate_kernel=False)
    assert jnp.allclose(out["prediction"], ref_f32["prediction"], atol=1e-1, rtol=1e-1)
    assert jnp.allclose(out["loss"], ref_f32["loss"], atol=1e-1, rtol=1e-1)

    print("KERNEL_OK")
</pallas_src>

<mosaic_0001>
module attributes {stable_mosaic.version = 11 : i64} {
  func.func @_lstm_mid_kernel(%arg0: i32, %arg1: memref<8x8x16xbf16, #tpu.memory_space<vmem>>, %arg2: memref<16x128xbf16, #tpu.memory_space<vmem>>, %arg3: memref<32x128xbf16, #tpu.memory_space<vmem>>, %arg4: memref<1x128xf32, #tpu.memory_space<vmem>>, %arg5: memref<8x8x32xbf16, #tpu.memory_space<vmem>>, %arg6: memref<8x8x128xbf16, #tpu.memory_space<vmem>>) attributes {dimension_semantics = [#tpu.dimension_semantics<parallel>], iteration_bounds = array<i64: 1>, scalar_prefetch = 0 : i64, scratch_operands = 1 : i64, tpu.core_type = #tpu.core_type<tc>, window_params = [{transform_indices = @transform_0, window_bounds = array<i64: 8, 8, 16>}, {pipeline_mode = #tpu.pipeline_mode<synchronous>, transform_indices = @transform_1, window_bounds = array<i64: 16, 128>}, {pipeline_mode = #tpu.pipeline_mode<synchronous>, transform_indices = @transform_2, window_bounds = array<i64: 32, 128>}, {pipeline_mode = #tpu.pipeline_mode<synchronous>, transform_indices = @transform_3, window_bounds = array<i64: 1, 128>}, {transform_indices = @transform_4, window_bounds = array<i64: 8, 8, 32>}]} {
    %c0 = arith.constant 0 : index
    %c0_0 = arith.constant 0 : index
    %c0_1 = arith.constant 0 : index
    %0 = vector.load %arg1[%c0, %c0_0, %c0_1] : memref<8x8x16xbf16, #tpu.memory_space<vmem>>, vector<8x8x16xbf16>
    %1 = vector.shape_cast %0 : vector<8x8x16xbf16> to vector<64x16xbf16>
    %c0_2 = arith.constant 0 : index
    %c0_3 = arith.constant 0 : index
    %2 = vector.load %arg2[%c0_2, %c0_3] : memref<16x128xbf16, #tpu.memory_space<vmem>>, vector<16x128xbf16>
    %cst = arith.constant dense<0.000000e+00> : vector<64x128xf32>
    %3 = tpu.matmul %1, %2, %cst {dimension_numbers = #tpu.dot_dimension_numbers<[1], [0], [0], [1], [0, 0, 1, 1], [], []>} : vector<64x16xbf16>, vector<16x128xbf16>, vector<64x128xf32> -> vector<64x128xf32>
    %c0_4 = arith.constant 0 : index
    %c0_5 = arith.constant 0 : index
    %4 = vector.load %arg4[%c0_4, %c0_5] : memref<1x128xf32, #tpu.memory_space<vmem>>, vector<1x128xf32>
    %5 = vector.broadcast %4 : vector<1x128xf32> to vector<64x128xf32>
    %6 = arith.addf %3, %5 : vector<64x128xf32>
    %7 = vector.shape_cast %6 : vector<64x128xf32> to vector<8x8x128xf32>
    %8 = arith.truncf %7 : vector<8x8x128xf32> to vector<8x8x128xbf16>
    %c0_6 = arith.constant 0 : index
    %c0_7 = arith.constant 0 : index
    %c0_8 = arith.constant 0 : index
    %9 = vector.load %arg6[%c0_6, %c0_7, %c0_8] : memref<8x8x128xbf16, #tpu.memory_space<vmem>>, vector<8x8x128xbf16>
    tpu.vector_store %arg6[%c0_6, %c0_7, %c0_8], %8 {strides = array<i32>} : memref<8x8x128xbf16, #tpu.memory_space<vmem>>, vector<8x8x128xbf16>,
    %c0_9 = arith.constant 0 : index
    %c0_10 = arith.constant 0 : index
    %10 = vector.load %arg3[%c0_9, %c0_10] : memref<32x128xbf16, #tpu.memory_space<vmem>>, vector<32x128xbf16>
    %cst_11 = arith.constant 0.000000e+00 : f32
    %11 = vector.broadcast %cst_11 : f32 to vector<8x32xf32>
    %cst_12 = arith.constant 0.000000e+00 : f32
    %12 = vector.broadcast %cst_12 : f32 to vector<8x32xf32>
    %c0_i32 = arith.constant 0 : i32
    %13 = arith.index_cast %c0_i32 : i32 to index
    %c0_13 = arith.constant 0 : index
    %c0_14 = arith.constant 0 : index
    %14 = vector.load %arg6[%13, %c0_13, %c0_14] : memref<8x8x128xbf16, #tpu.memory_space<vmem>>, vector<1x8x128xbf16>
    %15 = vector.shape_cast %14 : vector<1x8x128xbf16> to vector<8x128xbf16>
    %16 = arith.extf %15 : vector<8x128xbf16> to vector<8x128xf32>
    %17 = arith.truncf %11 : vector<8x32xf32> to vector<8x32xbf16>
    %cst_15 = arith.constant dense<0.000000e+00> : vector<8x128xf32>
    %18 = tpu.matmul %17, %10, %cst_15 {dimension_numbers = #tpu.dot_dimension_numbers<[1], [0], [0], [1], [0, 0, 1, 1], [], []>} : vector<8x32xbf16>, vector<32x128xbf16>, vector<8x128xf32> -> vector<8x128xf32>
    %19 = arith.addf %16, %18 : vector<8x128xf32>
    %20 = vector.extract_strided_slice %19 {offsets = [0, 0], sizes = [8, 96], strides = [1, 1]} : vector<8x128xf32> to vector<8x96xf32>
    %21 = arith.negf %20 : vector<8x96xf32>
    %22 = math.exp %21 : vector<8x96xf32>
    %cst_16 = arith.constant 1.000000e+00 : f32
    %23 = vector.broadcast %cst_16 : f32 to vector<8x96xf32>
    %24 = arith.addf %23, %22 : vector<8x96xf32>
    %25 = arith.divf %23, %24 : vector<8x96xf32>
    %26 = vector.extract_strided_slice %25 {offsets = [0, 0], sizes = [8, 32], strides = [1, 1]} : vector<8x96xf32> to vector<8x32xf32>
    %27 = vector.extract_strided_slice %25 {offsets = [0, 32], sizes = [8, 32], strides = [1, 1]} : vector<8x96xf32> to vector<8x32xf32>
    %28 = vector.extract_strided_slice %25 {offsets = [0, 64], sizes = [8, 32], strides = [1, 1]} : vector<8x96xf32> to vector<8x32xf32>
    %29 = vector.extract_strided_slice %19 {offsets = [0, 96], sizes = [8, 32], strides = [1, 1]} : vector<8x128xf32> to vector<8x32xf32>
    %30 = math.tanh %29 : vector<8x32xf32>
    %31 = arith.mulf %27, %12 : vector<8x32xf32>
    %32 = arith.mulf %26, %30 : vector<8x32xf32>
    %33 = arith.addf %31, %32 : vector<8x32xf32>
    %34 = math.tanh %33 : vector<8x32xf32>
    %35 = arith.mulf %28, %34 : vector<8x32xf32>
    %36 = arith.truncf %35 : vector<8x32xf32> to vector<8x32xbf16>
    %37 = arith.index_cast %c0_i32 : i32 to index
    %c0_17 = arith.constant 0 : index
    %c0_18 = arith.constant 0 : index
    %38 = vector.load %arg5[%37, %c0_17, %c0_18] : memref<8x8x32xbf16, #tpu.memory_space<vmem>>, vector<1x8x32xbf16>
    %39 = vector.shape_cast %38 : vector<1x8x32xbf16> to vector<8x32xbf16>
    %40 = vector.shape_cast %36 : vector<8x32xbf16> to vector<1x8x32xbf16>
    tpu.vector_store %arg5[%37, %c0_17, %c0_18], %40 {strides = array<i32>} : memref<8x8x32xbf16, #tpu.memory_space<vmem>>, vector<1x8x32xbf16>,
    %c1_i32 = arith.constant 1 : i32
    %41 = arith.index_cast %c1_i32 : i32 to index
    %c0_19 = arith.constant 0 : index
    %c0_20 = arith.constant 0 : index
    %42 = vector.load %arg6[%41, %c0_19, %c0_20] : memref<8x8x128xbf16, #tpu.memory_space<vmem>>, vector<1x8x128xbf16>
    %43 = vector.shape_cast %42 : vector<1x8x128xbf16> to vector<8x128xbf16>
    %44 = arith.extf %43 : vector<8x128xbf16> to vector<8x128xf32>
    %45 = arith.truncf %35 : vector<8x32xf32> to vector<8x32xbf16>
    %cst_21 = arith.constant dense<0.000000e+00> : vector<8x128xf32>
    %46 = tpu.matmul %45, %10, %cst_21 {dimension_numbers = #tpu.dot_dimension_numbers<[1], [0], [0], [1], [0, 0, 1, 1], [], []>} : vector<8x32xbf16>, vector<32x128xbf16>, vector<8x128xf32> -> vector<8x128xf32>
    %47 = arith.addf %44, %46 : vector<8x128xf32>
    %48 = vector.extract_strided_slice %47 {offsets = [0, 0], sizes = [8, 96], strides = [1, 1]} : vector<8x128xf32> to vector<8x96xf32>
    %49 = arith.negf %48 : vector<8x96xf32>
    %50 = math.exp %49 : vector<8x96xf32>
    %cst_22 = arith.constant 1.000000e+00 : f32
    %51 = vector.broadcast %cst_22 : f32 to vector<8x96xf32>
    %52 = arith.addf %51, %50 : vector<8x96xf32>
    %53 = arith.divf %51, %52 : vector<8x96xf32>
    %54 = vector.extract_strided_slice %53 {offsets = [0, 0], sizes = [8, 32], strides = [1, 1]} : vector<8x96xf32> to vector<8x32xf32>
    %55 = vector.extract_strided_slice %53 {offsets = [0, 32], sizes = [8, 32], strides = [1, 1]} : vector<8x96xf32> to vector<8x32xf32>
    %56 = vector.extract_strided_slice %53 {offsets = [0, 64], sizes = [8, 32], strides = [1, 1]} : vector<8x96xf32> to vector<8x32xf32>
    %57 = vector.extract_strided_slice %47 {offsets = [0, 96], sizes = [8, 32], strides = [1, 1]} : vector<8x128xf32> to vector<8x32xf32>
    %58 = math.tanh %57 : vector<8x32xf32>
    %59 = arith.mulf %55, %33 : vector<8x32xf32>
    %60 = arith.mulf %54, %58 : vector<8x32xf32>
    %61 = arith.addf %59, %60 : vector<8x32xf32>
    %62 = math.tanh %61 : vector<8x32xf32>
    %63 = arith.mulf %56, %62 : vector<8x32xf32>
    %64 = arith.truncf %63 : vector<8x32xf32> to vector<8x32xbf16>
    %65 = arith.index_cast %c1_i32 : i32 to index
    %c0_23 = arith.constant 0 : index
    %c0_24 = arith.constant 0 : index
    %66 = vector.load %arg5[%65, %c0_23, %c0_24] : memref<8x8x32xbf16, #tpu.memory_space<vmem>>, vector<1x8x32xbf16>
    %67 = vector.shape_cast %66 : vector<1x8x32xbf16> to vector<8x32xbf16>
    %68 = vector.shape_cast %64 : vector<8x32xbf16> to vector<1x8x32xbf16>
    tpu.vector_store %arg5[%65, %c0_23, %c0_24], %68 {strides = array<i32>} : memref<8x8x32xbf16, #tpu.memory_space<vmem>>, vector<1x8x32xbf16>,
    %c2_i32 = arith.constant 2 : i32
    %69 = arith.index_cast %c2_i32 : i32 to index
    %c0_25 = arith.constant 0 : index
    %c0_26 = arith.constant 0 : index
    %70 = vector.load %arg6[%69, %c0_25, %c0_26] : memref<8x8x128xbf16, #tpu.memory_space<vmem>>, vector<1x8x128xbf16>
    %71 = vector.shape_cast %70 : vector<1x8x128xbf16> to vector<8x128xbf16>
    %72 = arith.extf %71 : vector<8x128xbf16> to vector<8x128xf32>
    %73 = arith.truncf %63 : vector<8x32xf32> to vector<8x32xbf16>
    %cst_27 = arith.constant dense<0.000000e+00> : vector<8x128xf32>
    %74 = tpu.matmul %73, %10, %cst_27 {dimension_numbers = #tpu.dot_dimension_numbers<[1], [0], [0], [1], [0, 0, 1, 1], [], []>} : vector<8x32xbf16>, vector<32x128xbf16>, vector<8x128xf32> -> vector<8x128xf32>
    %75 = arith.addf %72, %74 : vector<8x128xf32>
    %76 = vector.extract_strided_slice %75 {offsets = [0, 0], sizes = [8, 96], strides = [1, 1]} : vector<8x128xf32> to vector<8x96xf32>
    %77 = arith.negf %76 : vector<8x96xf32>
    %78 = math.exp %77 : vector<8x96xf32>
    %cst_28 = arith.constant 1.000000e+00 : f32
    %79 = vector.broadcast %cst_28 : f32 to vector<8x96xf32>
    %80 = arith.addf %79, %78 : vector<8x96xf32>
    %81 = arith.divf %79, %80 : vector<8x96xf32>
    %82 = vector.extract_strided_slice %81 {offsets = [0, 0], sizes = [8, 32], strides = [1, 1]} : vector<8x96xf32> to vector<8x32xf32>
    %83 = vector.extract_strided_slice %81 {offsets = [0, 32], sizes = [8, 32], strides = [1, 1]} : vector<8x96xf32> to vector<8x32xf32>
    %84 = vector.extract_strided_slice %81 {offsets = [0, 64], sizes = [8, 32], strides = [1, 1]} : vector<8x96xf32> to vector<8x32xf32>
    %85 = vector.extract_strided_slice %75 {offsets = [0, 96], sizes = [8, 32], strides = [1, 1]} : vector<8x128xf32> to vector<8x32xf32>
    %86 = math.tanh %85 : vector<8x32xf32>
    %87 = arith.mulf %83, %61 : vector<8x32xf32>
    %88 = arith.mulf %82, %86 : vector<8x32xf32>
    %89 = arith.addf %87, %88 : vector<8x32xf32>
    %90 = math.tanh %89 : vector<8x32xf32>
    %91 = arith.mulf %84, %90 : vector<8x32xf32>
    %92 = arith.truncf %91 : vector<8x32xf32> to vector<8x32xbf16>
    %93 = arith.index_cast %c2_i32 : i32 to index
    %c0_29 = arith.constant 0 : index
    %c0_30 = arith.constant 0 : index
    %94 = vector.load %arg5[%93, %c0_29, %c0_30] : memref<8x8x32xbf16, #tpu.memory_space<vmem>>, vector<1x8x32xbf16>
    %95 = vector.shape_cast %94 : vector<1x8x32xbf16> to vector<8x32xbf16>
    %96 = vector.shape_cast %92 : vector<8x32xbf16> to vector<1x8x32xbf16>
    tpu.vector_store %arg5[%93, %c0_29, %c0_30], %96 {strides = array<i32>} : memref<8x8x32xbf16, #tpu.memory_space<vmem>>, vector<1x8x32xbf16>,
    %c3_i32 = arith.constant 3 : i32
    %97 = arith.index_cast %c3_i32 : i32 to index
    %c0_31 = arith.constant 0 : index
    %c0_32 = arith.constant 0 : index
    %98 = vector.load %arg6[%97, %c0_31, %c0_32] : memref<8x8x128xbf16, #tpu.memory_space<vmem>>, vector<1x8x128xbf16>
    %99 = vector.shape_cast %98 : vector<1x8x128xbf16> to vector<8x128xbf16>
    %100 = arith.extf %99 : vector<8x128xbf16> to vector<8x128xf32>
    %101 = arith.truncf %91 : vector<8x32xf32> to vector<8x32xbf16>
    %cst_33 = arith.constant dense<0.000000e+00> : vector<8x128xf32>
    %102 = tpu.matmul %101, %10, %cst_33 {dimension_numbers = #tpu.dot_dimension_numbers<[1], [0], [0], [1], [0, 0, 1, 1], [], []>} : vector<8x32xbf16>, vector<32x128xbf16>, vector<8x128xf32> -> vector<8x128xf32>
    %103 = arith.addf %100, %102 : vector<8x128xf32>
    %104 = vector.extract_strided_slice %103 {offsets = [0, 0], sizes = [8, 96], strides = [1, 1]} : vector<8x128xf32> to vector<8x96xf32>
    %105 = arith.negf %104 : vector<8x96xf32>
    %106 = math.exp %105 : vector<8x96xf32>
    %cst_34 = arith.constant 1.000000e+00 : f32
    %107 = vector.broadcast %cst_34 : f32 to vector<8x96xf32>
    %108 = arith.addf %107, %106 : vector<8x96xf32>
    %109 = arith.divf %107, %108 : vector<8x96xf32>
    %110 = vector.extract_strided_slice %109 {offsets = [0, 0], sizes = [8, 32], strides = [1, 1]} : vector<8x96xf32> to vector<8x32xf32>
    %111 = vector.extract_strided_slice %109 {offsets = [0, 32], sizes = [8, 32], strides = [1, 1]} : vector<8x96xf32> to vector<8x32xf32>
    %112 = vector.extract_strided_slice %109 {offsets = [0, 64], sizes = [8, 32], strides = [1, 1]} : vector<8x96xf32> to vector<8x32xf32>
    %113 = vector.extract_strided_slice %103 {offsets = [0, 96], sizes = [8, 32], strides = [1, 1]} : vector<8x128xf32> to vector<8x32xf32>
    %114 = math.tanh %113 : vector<8x32xf32>
    %115 = arith.mulf %111, %89 : vector<8x32xf32>
    %116 = arith.mulf %110, %114 : vector<8x32xf32>
    %117 = arith.addf %115, %116 : vector<8x32xf32>
    %118 = math.tanh %117 : vector<8x32xf32>
    %119 = arith.mulf %112, %118 : vector<8x32xf32>
    %120 = arith.truncf %119 : vector<8x32xf32> to vector<8x32xbf16>
    %121 = arith.index_cast %c3_i32 : i32 to index
    %c0_35 = arith.constant 0 : index
    %c0_36 = arith.constant 0 : index
    %122 = vector.load %arg5[%121, %c0_35, %c0_36] : memref<8x8x32xbf16, #tpu.memory_space<vmem>>, vector<1x8x32xbf16>
    %123 = vector.shape_cast %122 : vector<1x8x32xbf16> to vector<8x32xbf16>
    %124 = vector.shape_cast %120 : vector<8x32xbf16> to vector<1x8x32xbf16>
    tpu.vector_store %arg5[%121, %c0_35, %c0_36], %124 {strides = array<i32>} : memref<8x8x32xbf16, #tpu.memory_space<vmem>>, vector<1x8x32xbf16>,
    %c4_i32 = arith.constant 4 : i32
    %125 = arith.index_cast %c4_i32 : i32 to index
    %c0_37 = arith.constant 0 : index
    %c0_38 = arith.constant 0 : index
    %126 = vector.load %arg6[%125, %c0_37, %c0_38] : memref<8x8x128xbf16, #tpu.memory_space<vmem>>, vector<1x8x128xbf16>
    %127 = vector.shape_cast %126 : vector<1x8x128xbf16> to vector<8x128xbf16>
    %128 = arith.extf %127 : vector<8x128xbf16> to vector<8x128xf32>
    %129 = arith.truncf %119 : vector<8x32xf32> to vector<8x32xbf16>
    %cst_39 = arith.constant dense<0.000000e+00> : vector<8x128xf32>
    %130 = tpu.matmul %129, %10, %cst_39 {dimension_numbers = #tpu.dot_dimension_numbers<[1], [0], [0], [1], [0, 0, 1, 1], [], []>} : vector<8x32xbf16>, vector<32x128xbf16>, vector<8x128xf32> -> vector<8x128xf32>
    %131 = arith.addf %128, %130 : vector<8x128xf32>
    %132 = vector.extract_strided_slice %131 {offsets = [0, 0], sizes = [8, 96], strides = [1, 1]} : vector<8x128xf32> to vector<8x96xf32>
    %133 = arith.negf %132 : vector<8x96xf32>
    %134 = math.exp %133 : vector<8x96xf32>
    %cst_40 = arith.constant 1.000000e+00 : f32
    %135 = vector.broadcast %cst_40 : f32 to vector<8x96xf32>
    %136 = arith.addf %135, %134 : vector<8x96xf32>
    %137 = arith.divf %135, %136 : vector<8x96xf32>
    %138 = vector.extract_strided_slice %137 {offsets = [0, 0], sizes = [8, 32], strides = [1, 1]} : vector<8x96xf32> to vector<8x32xf32>
    %139 = vector.extract_strided_slice %137 {offsets = [0, 32], sizes = [8, 32], strides = [1, 1]} : vector<8x96xf32> to vector<8x32xf32>
    %140 = vector.extract_strided_slice %137 {offsets = [0, 64], sizes = [8, 32], strides = [1, 1]} : vector<8x96xf32> to vector<8x32xf32>
    %141 = vector.extract_strided_slice %131 {offsets = [0, 96], sizes = [8, 32], strides = [1, 1]} : vector<8x128xf32> to vector<8x32xf32>
    %142 = math.tanh %141 : vector<8x32xf32>
    %143 = arith.mulf %139, %117 : vector<8x32xf32>
    %144 = arith.mulf %138, %142 : vector<8x32xf32>
    %145 = arith.addf %143, %144 : vector<8x32xf32>
    %146 = math.tanh %145 : vector<8x32xf32>
    %147 = arith.mulf %140, %146 : vector<8x32xf32>
    %148 = arith.truncf %147 : vector<8x32xf32> to vector<8x32xbf16>
    %149 = arith.index_cast %c4_i32 : i32 to index
    %c0_41 = arith.constant 0 : index
    %c0_42 = arith.constant 0 : index
    %150 = vector.load %arg5[%149, %c0_41, %c0_42] : memref<8x8x32xbf16, #tpu.memory_space<vmem>>, vector<1x8x32xbf16>
    %151 = vector.shape_cast %150 : vector<1x8x32xbf16> to vector<8x32xbf16>
    %152 = vector.shape_cast %148 : vector<8x32xbf16> to vector<1x8x32xbf16>
    tpu.vector_store %arg5[%149, %c0_41, %c0_42], %152 {strides = array<i32>} : memref<8x8x32xbf16, #tpu.memory_space<vmem>>, vector<1x8x32xbf16>,
    %c5_i32 = arith.constant 5 : i32
    %153 = arith.index_cast %c5_i32 : i32 to index
    %c0_43 = arith.constant 0 : index
    %c0_44 = arith.constant 0 : index
    %154 = vector.load %arg6[%153, %c0_43, %c0_44] : memref<8x8x128xbf16, #tpu.memory_space<vmem>>, vector<1x8x128xbf16>
    %155 = vector.shape_cast %154 : vector<1x8x128xbf16> to vector<8x128xbf16>
    %156 = arith.extf %155 : vector<8x128xbf16> to vector<8x128xf32>
    %157 = arith.truncf %147 : vector<8x32xf32> to vector<8x32xbf16>
    %cst_45 = arith.constant dense<0.000000e+00> : vector<8x128xf32>
    %158 = tpu.matmul %157, %10, %cst_45 {dimension_numbers = #tpu.dot_dimension_numbers<[1], [0], [0], [1], [0, 0, 1, 1], [], []>} : vector<8x32xbf16>, vector<32x128xbf16>, vector<8x128xf32> -> vector<8x128xf32>
    %159 = arith.addf %156, %158 : vector<8x128xf32>
    %160 = vector.extract_strided_slice %159 {offsets = [0, 0], sizes = [8, 96], strides = [1, 1]} : vector<8x128xf32> to vector<8x96xf32>
    %161 = arith.negf %160 : vector<8x96xf32>
    %162 = math.exp %161 : vector<8x96xf32>
    %cst_46 = arith.constant 1.000000e+00 : f32
    %163 = vector.broadcast %cst_46 : f32 to vector<8x96xf32>
    %164 = arith.addf %163, %162 : vector<8x96xf32>
    %165 = arith.divf %163, %164 : vector<8x96xf32>
    %166 = vector.extract_strided_slice %165 {offsets = [0, 0], sizes = [8, 32], strides = [1, 1]} : vector<8x96xf32> to vector<8x32xf32>
    %167 = vector.extract_strided_slice %165 {offsets = [0, 32], sizes = [8, 32], strides = [1, 1]} : vector<8x96xf32> to vector<8x32xf32>
    %168 = vector.extract_strided_slice %165 {offsets = [0, 64], sizes = [8, 32], strides = [1, 1]} : vector<8x96xf32> to vector<8x32xf32>
    %169 = vector.extract_strided_slice %159 {offsets = [0, 96], sizes = [8, 32], strides = [1, 1]} : vector<8x128xf32> to vector<8x32xf32>
    %170 = math.tanh %169 : vector<8x32xf32>
    %171 = arith.mulf %167, %145 : vector<8x32xf32>
    %172 = arith.mulf %166, %170 : vector<8x32xf32>
    %173 = arith.addf %171, %172 : vector<8x32xf32>
    %174 = math.tanh %173 : vector<8x32xf32>
    %175 = arith.mulf %168, %174 : vector<8x32xf32>
    %176 = arith.truncf %175 : vector<8x32xf32> to vector<8x32xbf16>
    %177 = arith.index_cast %c5_i32 : i32 to index
    %c0_47 = arith.constant 0 : index
    %c0_48 = arith.constant 0 : index
    %178 = vector.load %arg5[%177, %c0_47, %c0_48] : memref<8x8x32xbf16, #tpu.memory_space<vmem>>, vector<1x8x32xbf16>
    %179 = vector.shape_cast %178 : vector<1x8x32xbf16> to vector<8x32xbf16>
    %180 = vector.shape_cast %176 : vector<8x32xbf16> to vector<1x8x32xbf16>
    tpu.vector_store %arg5[%177, %c0_47, %c0_48], %180 {strides = array<i32>} : memref<8x8x32xbf16, #tpu.memory_space<vmem>>, vector<1x8x32xbf16>,
    %c6_i32 = arith.constant 6 : i32
    %181 = arith.index_cast %c6_i32 : i32 to index
    %c0_49 = arith.constant 0 : index
    %c0_50 = arith.constant 0 : index
    %182 = vector.load %arg6[%181, %c0_49, %c0_50] : memref<8x8x128xbf16, #tpu.memory_space<vmem>>, vector<1x8x128xbf16>
    %183 = vector.shape_cast %182 : vector<1x8x128xbf16> to vector<8x128xbf16>
    %184 = arith.extf %183 : vector<8x128xbf16> to vector<8x128xf32>
    %185 = arith.truncf %175 : vector<8x32xf32> to vector<8x32xbf16>
    %cst_51 = arith.constant dense<0.000000e+00> : vector<8x128xf32>
    %186 = tpu.matmul %185, %10, %cst_51 {dimension_numbers = #tpu.dot_dimension_numbers<[1], [0], [0], [1], [0, 0, 1, 1], [], []>} : vector<8x32xbf16>, vector<32x128xbf16>, vector<8x128xf32> -> vector<8x128xf32>
    %187 = arith.addf %184, %186 : vector<8x128xf32>
    %188 = vector.extract_strided_slice %187 {offsets = [0, 0], sizes = [8, 96], strides = [1, 1]} : vector<8x128xf32> to vector<8x96xf32>
    %189 = arith.negf %188 : vector<8x96xf32>
    %190 = math.exp %189 : vector<8x96xf32>
    %cst_52 = arith.constant 1.000000e+00 : f32
    %191 = vector.broadcast %cst_52 : f32 to vector<8x96xf32>
    %192 = arith.addf %191, %190 : vector<8x96xf32>
    %193 = arith.divf %191, %192 : vector<8x96xf32>
    %194 = vector.extract_strided_slice %193 {offsets = [0, 0], sizes = [8, 32], strides = [1, 1]} : vector<8x96xf32> to vector<8x32xf32>
    %195 = vector.extract_strided_slice %193 {offsets = [0, 32], sizes = [8, 32], strides = [1, 1]} : vector<8x96xf32> to vector<8x32xf32>
    %196 = vector.extract_strided_slice %193 {offsets = [0, 64], sizes = [8, 32], strides = [1, 1]} : vector<8x96xf32> to vector<8x32xf32>
    %197 = vector.extract_strided_slice %187 {offsets = [0, 96], sizes = [8, 32], strides = [1, 1]} : vector<8x128xf32> to vector<8x32xf32>
    %198 = math.tanh %197 : vector<8x32xf32>
    %199 = arith.mulf %195, %173 : vector<8x32xf32>
    %200 = arith.mulf %194, %198 : vector<8x32xf32>
    %201 = arith.addf %199, %200 : vector<8x32xf32>
    %202 = math.tanh %201 : vector<8x32xf32>
    %203 = arith.mulf %196, %202 : vector<8x32xf32>
    %204 = arith.truncf %203 : vector<8x32xf32> to vector<8x32xbf16>
    %205 = arith.index_cast %c6_i32 : i32 to index
    %c0_53 = arith.constant 0 : index
    %c0_54 = arith.constant 0 : index
    %206 = vector.load %arg5[%205, %c0_53, %c0_54] : memref<8x8x32xbf16, #tpu.memory_space<vmem>>, vector<1x8x32xbf16>
    %207 = vector.shape_cast %206 : vector<1x8x32xbf16> to vector<8x32xbf16>
    %208 = vector.shape_cast %204 : vector<8x32xbf16> to vector<1x8x32xbf16>
    tpu.vector_store %arg5[%205, %c0_53, %c0_54], %208 {strides = array<i32>} : memref<8x8x32xbf16, #tpu.memory_space<vmem>>, vector<1x8x32xbf16>,
    %c7_i32 = arith.constant 7 : i32
    %209 = arith.index_cast %c7_i32 : i32 to index
    %c0_55 = arith.constant 0 : index
    %c0_56 = arith.constant 0 : index
    %210 = vector.load %arg6[%209, %c0_55, %c0_56] : memref<8x8x128xbf16, #tpu.memory_space<vmem>>, vector<1x8x128xbf16>
    %211 = vector.shape_cast %210 : vector<1x8x128xbf16> to vector<8x128xbf16>
    %212 = arith.extf %211 : vector<8x128xbf16> to vector<8x128xf32>
    %213 = arith.truncf %203 : vector<8x32xf32> to vector<8x32xbf16>
    %cst_57 = arith.constant dense<0.000000e+00> : vector<8x128xf32>
    %214 = tpu.matmul %213, %10, %cst_57 {dimension_numbers = #tpu.dot_dimension_numbers<[1], [0], [0], [1], [0, 0, 1, 1], [], []>} : vector<8x32xbf16>, vector<32x128xbf16>, vector<8x128xf32> -> vector<8x128xf32>
    %215 = arith.addf %212, %214 : vector<8x128xf32>
    %216 = vector.extract_strided_slice %215 {offsets = [0, 0], sizes = [8, 96], strides = [1, 1]} : vector<8x128xf32> to vector<8x96xf32>
    %217 = arith.negf %216 : vector<8x96xf32>
    %218 = math.exp %217 : vector<8x96xf32>
    %cst_58 = arith.constant 1.000000e+00 : f32
    %219 = vector.broadcast %cst_58 : f32 to vector<8x96xf32>
    %220 = arith.addf %219, %218 : vector<8x96xf32>
    %221 = arith.divf %219, %220 : vector<8x96xf32>
    %222 = vector.extract_strided_slice %221 {offsets = [0, 0], sizes = [8, 32], strides = [1, 1]} : vector<8x96xf32> to vector<8x32xf32>
    %223 = vector.extract_strided_slice %221 {offsets = [0, 32], sizes = [8, 32], strides = [1, 1]} : vector<8x96xf32> to vector<8x32xf32>
    %224 = vector.extract_strided_slice %221 {offsets = [0, 64], sizes = [8, 32], strides = [1, 1]} : vector<8x96xf32> to vector<8x32xf32>
    %225 = vector.extract_strided_slice %215 {offsets = [0, 96], sizes = [8, 32], strides = [1, 1]} : vector<8x128xf32> to vector<8x32xf32>
    %226 = math.tanh %225 : vector<8x32xf32>
    %227 = arith.mulf %223, %201 : vector<8x32xf32>
    %228 = arith.mulf %222, %226 : vector<8x32xf32>
    %229 = arith.addf %227, %228 : vector<8x32xf32>
    %230 = math.tanh %229 : vector<8x32xf32>
    %231 = arith.mulf %224, %230 : vector<8x32xf32>
    %232 = arith.truncf %231 : vector<8x32xf32> to vector<8x32xbf16>
    %233 = arith.index_cast %c7_i32 : i32 to index
    %c0_59 = arith.constant 0 : index
    %c0_60 = arith.constant 0 : index
    %234 = vector.load %arg5[%233, %c0_59, %c0_60] : memref<8x8x32xbf16, #tpu.memory_space<vmem>>, vector<1x8x32xbf16>
    %235 = vector.shape_cast %234 : vector<1x8x32xbf16> to vector<8x32xbf16>
    %236 = vector.shape_cast %232 : vector<8x32xbf16> to vector<1x8x32xbf16>
    tpu.vector_store %arg5[%233, %c0_59, %c0_60], %236 {strides = array<i32>} : memref<8x8x32xbf16, #tpu.memory_space<vmem>>, vector<1x8x32xbf16>,
    %c8_i32 = arith.constant 8 : i32
    return
  }
  func.func @transform_0(%arg0: i32) -> (i32, i32, i32) {
    %c0_i32 = arith.constant 0 : i32
    %c0_i32_0 = arith.constant 0 : i32
    %c0_i32_1 = arith.constant 0 : i32
    return %c0_i32, %arg0, %c0_i32_0 : i32, i32, i32
  }
  func.func @transform_1(%arg0: i32) -> (i32, i32) {
    %c0_i32 = arith.constant 0 : i32
    %c0_i32_0 = arith.constant 0 : i32
    %c0_i32_1 = arith.constant 0 : i32
    return %c0_i32, %c0_i32_0 : i32, i32
  }
  func.func @transform_2(%arg0: i32) -> (i32, i32) {
    %c0_i32 = arith.constant 0 : i32
    %c0_i32_0 = arith.constant 0 : i32
    %c0_i32_1 = arith.constant 0 : i32
    return %c0_i32, %c0_i32_0 : i32, i32
  }
  func.func @transform_3(%arg0: i32) -> (i32, i32) {
    %c0_i32 = arith.constant 0 : i32
    %c0_i32_0 = arith.constant 0 : i32
    %c0_i32_1 = arith.constant 0 : i32
    return %c0_i32, %c0_i32_0 : i32, i32
  }
  func.func @transform_4(%arg0: i32) -> (i32, i32, i32) {
    %c0_i32 = arith.constant 0 : i32
    %c0_i32_0 = arith.constant 0 : i32
    %c0_i32_1 = arith.constant 0 : i32
    return %c0_i32, %arg0, %c0_i32_0 : i32, i32, i32
  }
}

module attributes {stable_mosaic.version = 11 : i64} {
  func.func @_lstm_last_kernel(%arg0: i32, %arg1: memref<8x8x32xbf16, #tpu.memory_space<vmem>>, %arg2: memref<32x128xbf16, #tpu.memory_space<vmem>>, %arg3: memref<32x128xbf16, #tpu.memory_space<vmem>>, %arg4: memref<1x128xf32, #tpu.memory_space<vmem>>, %arg5: memref<8x1x32xf32, #tpu.memory_space<vmem>>, %arg6: memref<1x1xf32, #tpu.memory_space<vmem>>, %arg7: memref<8x1xf32, #tpu.memory_space<vmem>>, %arg8: memref<8x8x128xbf16, #tpu.memory_space<vmem>>) attributes {dimension_semantics = [#tpu.dimension_semantics<parallel>], iteration_bounds = array<i64: 1>, scalar_prefetch = 0 : i64, scratch_operands = 1 : i64, tpu.core_type = #tpu.core_type<tc>, window_params = [{transform_indices = @transform_0, window_bounds = array<i64: 8, 8, 32>}, {pipeline_mode = #tpu.pipeline_mode<synchronous>, transform_indices = @transform_1, window_bounds = array<i64: 32, 128>}, {pipeline_mode = #tpu.pipeline_mode<synchronous>, transform_indices = @transform_2, window_bounds = array<i64: 32, 128>}, {pipeline_mode = #tpu.pipeline_mode<synchronous>, transform_indices = @transform_3, window_bounds = array<i64: 1, 128>}, {pipeline_mode = #tpu.pipeline_mode<synchronous>, transform_indices = @transform_4, window_bounds = array<i64: 8, 1, 32>}, {pipeline_mode = #tpu.pipeline_mode<synchronous>, transform_indices = @transform_5, window_bounds = array<i64: 1, 1>}, {transform_indices = @transform_6, window_bounds = array<i64: 8, 1>}]} {
    %c0 = arith.constant 0 : index
    %c0_0 = arith.constant 0 : index
    %c0_1 = arith.constant 0 : index
    %0 = vector.load %arg1[%c0, %c0_0, %c0_1] : memref<8x8x32xbf16, #tpu.memory_space<vmem>>, vector<8x8x32xbf16>
    %1 = vector.shape_cast %0 : vector<8x8x32xbf16> to vector<64x32xbf16>
    %c0_2 = arith.constant 0 : index
    %c0_3 = arith.constant 0 : index
    %2 = vector.load %arg2[%c0_2, %c0_3] : memref<32x128xbf16, #tpu.memory_space<vmem>>, vector<32x128xbf16>
    %cst = arith.constant dense<0.000000e+00> : vector<64x128xf32>
    %3 = tpu.matmul %1, %2, %cst {dimension_numbers = #tpu.dot_dimension_numbers<[1], [0], [0], [1], [0, 0, 1, 1], [], []>} : vector<64x32xbf16>, vector<32x128xbf16>, vector<64x128xf32> -> vector<64x128xf32>
    %c0_4 = arith.constant 0 : index
    %c0_5 = arith.constant 0 : index
    %4 = vector.load %arg4[%c0_4, %c0_5] : memref<1x128xf32, #tpu.memory_space<vmem>>, vector<1x128xf32>
    %5 = vector.broadcast %4 : vector<1x128xf32> to vector<64x128xf32>
    %6 = arith.addf %3, %5 : vector<64x128xf32>
    %7 = vector.shape_cast %6 : vector<64x128xf32> to vector<8x8x128xf32>
    %8 = arith.truncf %7 : vector<8x8x128xf32> to vector<8x8x128xbf16>
    %c0_6 = arith.constant 0 : index
    %c0_7 = arith.constant 0 : index
    %c0_8 = arith.constant 0 : index
    %9 = vector.load %arg8[%c0_6, %c0_7, %c0_8] : memref<8x8x128xbf16, #tpu.memory_space<vmem>>, vector<8x8x128xbf16>
    tpu.vector_store %arg8[%c0_6, %c0_7, %c0_8], %8 {strides = array<i32>} : memref<8x8x128xbf16, #tpu.memory_space<vmem>>, vector<8x8x128xbf16>,
    %c0_9 = arith.constant 0 : index
    %c0_10 = arith.constant 0 : index
    %10 = vector.load %arg3[%c0_9, %c0_10] : memref<32x128xbf16, #tpu.memory_space<vmem>>, vector<32x128xbf16>
    %cst_11 = arith.constant 0.000000e+00 : f32
    %11 = vector.broadcast %cst_11 : f32 to vector<8x32xf32>
    %cst_12 = arith.constant 0.000000e+00 : f32
    %12 = vector.broadcast %cst_12 : f32 to vector<8x32xf32>
    %cst_13 = arith.constant 0.000000e+00 : f32
    %13 = vector.broadcast %cst_13 : f32 to vector<8x32xf32>
    %c0_i32 = arith.constant 0 : i32
    %14 = arith.index_cast %c0_i32 : i32 to index
    %c0_14 = arith.constant 0 : index
    %c0_15 = arith.constant 0 : index
    %15 = vector.load %arg8[%14, %c0_14, %c0_15] : memref<8x8x128xbf16, #tpu.memory_space<vmem>>, vector<1x8x128xbf16>
    %16 = vector.shape_cast %15 : vector<1x8x128xbf16> to vector<8x128xbf16>
    %17 = arith.extf %16 : vector<8x128xbf16> to vector<8x128xf32>
    %18 = arith.truncf %11 : vector<8x32xf32> to vector<8x32xbf16>
    %cst_16 = arith.constant dense<0.000000e+00> : vector<8x128xf32>
    %19 = tpu.matmul %18, %10, %cst_16 {dimension_numbers = #tpu.dot_dimension_numbers<[1], [0], [0], [1], [0, 0, 1, 1], [], []>} : vector<8x32xbf16>, vector<32x128xbf16>, vector<8x128xf32> -> vector<8x128xf32>
    %20 = arith.addf %17, %19 : vector<8x128xf32>
    %21 = vector.extract_strided_slice %20 {offsets = [0, 0], sizes = [8, 96], strides = [1, 1]} : vector<8x128xf32> to vector<8x96xf32>
    %22 = arith.negf %21 : vector<8x96xf32>
    %23 = math.exp %22 : vector<8x96xf32>
    %cst_17 = arith.constant 1.000000e+00 : f32
    %24 = vector.broadcast %cst_17 : f32 to vector<8x96xf32>
    %25 = arith.addf %24, %23 : vector<8x96xf32>
    %26 = arith.divf %24, %25 : vector<8x96xf32>
    %27 = vector.extract_strided_slice %26 {offsets = [0, 0], sizes = [8, 32], strides = [1, 1]} : vector<8x96xf32> to vector<8x32xf32>
    %28 = vector.extract_strided_slice %26 {offsets = [0, 32], sizes = [8, 32], strides = [1, 1]} : vector<8x96xf32> to vector<8x32xf32>
    %29 = vector.extract_strided_slice %26 {offsets = [0, 64], sizes = [8, 32], strides = [1, 1]} : vector<8x96xf32> to vector<8x32xf32>
    %30 = vector.extract_strided_slice %20 {offsets = [0, 96], sizes = [8, 32], strides = [1, 1]} : vector<8x128xf32> to vector<8x32xf32>
    %31 = math.tanh %30 : vector<8x32xf32>
    %32 = arith.mulf %28, %12 : vector<8x32xf32>
    %33 = arith.mulf %27, %31 : vector<8x32xf32>
    %34 = arith.addf %32, %33 : vector<8x32xf32>
    %35 = math.tanh %34 : vector<8x32xf32>
    %36 = arith.mulf %29, %35 : vector<8x32xf32>
    %37 = arith.index_cast %c0_i32 : i32 to index
    %c0_18 = arith.constant 0 : index
    %c0_19 = arith.constant 0 : index
    %38 = vector.load %arg5[%37, %c0_18, %c0_19] : memref<8x1x32xf32, #tpu.memory_space<vmem>>, vector<1x1x32xf32>
    %39 = vector.shape_cast %38 : vector<1x1x32xf32> to vector<1x32xf32>
    %40 = vector.broadcast %39 : vector<1x32xf32> to vector<8x32xf32>
    %41 = arith.mulf %36, %40 : vector<8x32xf32>
    %42 = arith.addf %13, %41 : vector<8x32xf32>
    %c1_i32 = arith.constant 1 : i32
    %43 = arith.index_cast %c1_i32 : i32 to index
    %c0_20 = arith.constant 0 : index
    %c0_21 = arith.constant 0 : index
    %44 = vector.load %arg8[%43, %c0_20, %c0_21] : memref<8x8x128xbf16, #tpu.memory_space<vmem>>, vector<1x8x128xbf16>
    %45 = vector.shape_cast %44 : vector<1x8x128xbf16> to vector<8x128xbf16>
    %46 = arith.extf %45 : vector<8x128xbf16> to vector<8x128xf32>
    %47 = arith.truncf %36 : vector<8x32xf32> to vector<8x32xbf16>
    %cst_22 = arith.constant dense<0.000000e+00> : vector<8x128xf32>
    %48 = tpu.matmul %47, %10, %cst_22 {dimension_numbers = #tpu.dot_dimension_numbers<[1], [0], [0], [1], [0, 0, 1, 1], [], []>} : vector<8x32xbf16>, vector<32x128xbf16>, vector<8x128xf32> -> vector<8x128xf32>
    %49 = arith.addf %46, %48 : vector<8x128xf32>
    %50 = vector.extract_strided_slice %49 {offsets = [0, 0], sizes = [8, 96], strides = [1, 1]} : vector<8x128xf32> to vector<8x96xf32>
    %51 = arith.negf %50 : vector<8x96xf32>
    %52 = math.exp %51 : vector<8x96xf32>
    %cst_23 = arith.constant 1.000000e+00 : f32
    %53 = vector.broadcast %cst_23 : f32 to vector<8x96xf32>
    %54 = arith.addf %53, %52 : vector<8x96xf32>
    %55 = arith.divf %53, %54 : vector<8x96xf32>
    %56 = vector.extract_strided_slice %55 {offsets = [0, 0], sizes = [8, 32], strides = [1, 1]} : vector<8x96xf32> to vector<8x32xf32>
    %57 = vector.extract_strided_slice %55 {offsets = [0, 32], sizes = [8, 32], strides = [1, 1]} : vector<8x96xf32> to vector<8x32xf32>
    %58 = vector.extract_strided_slice %55 {offsets = [0, 64], sizes = [8, 32], strides = [1, 1]} : vector<8x96xf32> to vector<8x32xf32>
    %59 = vector.extract_strided_slice %49 {offsets = [0, 96], sizes = [8, 32], strides = [1, 1]} : vector<8x128xf32> to vector<8x32xf32>
    %60 = math.tanh %59 : vector<8x32xf32>
    %61 = arith.mulf %57, %34 : vector<8x32xf32>
    %62 = arith.mulf %56, %60 : vector<8x32xf32>
    %63 = arith.addf %61, %62 : vector<8x32xf32>
    %64 = math.tanh %63 : vector<8x32xf32>
    %65 = arith.mulf %58, %64 : vector<8x32xf32>
    %66 = arith.index_cast %c1_i32 : i32 to index
    %c0_24 = arith.constant 0 : index
    %c0_25 = arith.constant 0 : index
    %67 = vector.load %arg5[%66, %c0_24, %c0_25] : memref<8x1x32xf32, #tpu.memory_space<vmem>>, vector<1x1x32xf32>
    %68 = vector.shape_cast %67 : vector<1x1x32xf32> to vector<1x32xf32>
    %69 = vector.broadcast %68 : vector<1x32xf32> to vector<8x32xf32>
    %70 = arith.mulf %65, %69 : vector<8x32xf32>
    %71 = arith.addf %42, %70 : vector<8x32xf32>
    %c2_i32 = arith.constant 2 : i32
    %72 = arith.index_cast %c2_i32 : i32 to index
    %c0_26 = arith.constant 0 : index
    %c0_27 = arith.constant 0 : index
    %73 = vector.load %arg8[%72, %c0_26, %c0_27] : memref<8x8x128xbf16, #tpu.memory_space<vmem>>, vector<1x8x128xbf16>
    %74 = vector.shape_cast %73 : vector<1x8x128xbf16> to vector<8x128xbf16>
    %75 = arith.extf %74 : vector<8x128xbf16> to vector<8x128xf32>
    %76 = arith.truncf %65 : vector<8x32xf32> to vector<8x32xbf16>
    %cst_28 = arith.constant dense<0.000000e+00> : vector<8x128xf32>
    %77 = tpu.matmul %76, %10, %cst_28 {dimension_numbers = #tpu.dot_dimension_numbers<[1], [0], [0], [1], [0, 0, 1, 1], [], []>} : vector<8x32xbf16>, vector<32x128xbf16>, vector<8x128xf32> -> vector<8x128xf32>
    %78 = arith.addf %75, %77 : vector<8x128xf32>
    %79 = vector.extract_strided_slice %78 {offsets = [0, 0], sizes = [8, 96], strides = [1, 1]} : vector<8x128xf32> to vector<8x96xf32>
    %80 = arith.negf %79 : vector<8x96xf32>
    %81 = math.exp %80 : vector<8x96xf32>
    %cst_29 = arith.constant 1.000000e+00 : f32
    %82 = vector.broadcast %cst_29 : f32 to vector<8x96xf32>
    %83 = arith.addf %82, %81 : vector<8x96xf32>
    %84 = arith.divf %82, %83 : vector<8x96xf32>
    %85 = vector.extract_strided_slice %84 {offsets = [0, 0], sizes = [8, 32], strides = [1, 1]} : vector<8x96xf32> to vector<8x32xf32>
    %86 = vector.extract_strided_slice %84 {offsets = [0, 32], sizes = [8, 32], strides = [1, 1]} : vector<8x96xf32> to vector<8x32xf32>
    %87 = vector.extract_strided_slice %84 {offsets = [0, 64], sizes = [8, 32], strides = [1, 1]} : vector<8x96xf32> to vector<8x32xf32>
    %88 = vector.extract_strided_slice %78 {offsets = [0, 96], sizes = [8, 32], strides = [1, 1]} : vector<8x128xf32> to vector<8x32xf32>
    %89 = math.tanh %88 : vector<8x32xf32>
    %90 = arith.mulf %86, %63 : vector<8x32xf32>
    %91 = arith.mulf %85, %89 : vector<8x32xf32>
    %92 = arith.addf %90, %91 : vector<8x32xf32>
    %93 = math.tanh %92 : vector<8x32xf32>
    %94 = arith.mulf %87, %93 : vector<8x32xf32>
    %95 = arith.index_cast %c2_i32 : i32 to index
    %c0_30 = arith.constant 0 : index
    %c0_31 = arith.constant 0 : index
    %96 = vector.load %arg5[%95, %c0_30, %c0_31] : memref<8x1x32xf32, #tpu.memory_space<vmem>>, vector<1x1x32xf32>
    %97 = vector.shape_cast %96 : vector<1x1x32xf32> to vector<1x32xf32>
    %98 = vector.broadcast %97 : vector<1x32xf32> to vector<8x32xf32>
    %99 = arith.mulf %94, %98 : vector<8x32xf32>
    %100 = arith.addf %71, %99 : vector<8x32xf32>
    %c3_i32 = arith.constant 3 : i32
    %101 = arith.index_cast %c3_i32 : i32 to index
    %c0_32 = arith.constant 0 : index
    %c0_33 = arith.constant 0 : index
    %102 = vector.load %arg8[%101, %c0_32, %c0_33] : memref<8x8x128xbf16, #tpu.memory_space<vmem>>, vector<1x8x128xbf16>
    %103 = vector.shape_cast %102 : vector<1x8x128xbf16> to vector<8x128xbf16>
    %104 = arith.extf %103 : vector<8x128xbf16> to vector<8x128xf32>
    %105 = arith.truncf %94 : vector<8x32xf32> to vector<8x32xbf16>
    %cst_34 = arith.constant dense<0.000000e+00> : vector<8x128xf32>
    %106 = tpu.matmul %105, %10, %cst_34 {dimension_numbers = #tpu.dot_dimension_numbers<[1], [0], [0], [1], [0, 0, 1, 1], [], []>} : vector<8x32xbf16>, vector<32x128xbf16>, vector<8x128xf32> -> vector<8x128xf32>
    %107 = arith.addf %104, %106 : vector<8x128xf32>
    %108 = vector.extract_strided_slice %107 {offsets = [0, 0], sizes = [8, 96], strides = [1, 1]} : vector<8x128xf32> to vector<8x96xf32>
    %109 = arith.negf %108 : vector<8x96xf32>
    %110 = math.exp %109 : vector<8x96xf32>
    %cst_35 = arith.constant 1.000000e+00 : f32
    %111 = vector.broadcast %cst_35 : f32 to vector<8x96xf32>
    %112 = arith.addf %111, %110 : vector<8x96xf32>
    %113 = arith.divf %111, %112 : vector<8x96xf32>
    %114 = vector.extract_strided_slice %113 {offsets = [0, 0], sizes = [8, 32], strides = [1, 1]} : vector<8x96xf32> to vector<8x32xf32>
    %115 = vector.extract_strided_slice %113 {offsets = [0, 32], sizes = [8, 32], strides = [1, 1]} : vector<8x96xf32> to vector<8x32xf32>
    %116 = vector.extract_strided_slice %113 {offsets = [0, 64], sizes = [8, 32], strides = [1, 1]} : vector<8x96xf32> to vector<8x32xf32>
    %117 = vector.extract_strided_slice %107 {offsets = [0, 96], sizes = [8, 32], strides = [1, 1]} : vector<8x128xf32> to vector<8x32xf32>
    %118 = math.tanh %117 : vector<8x32xf32>
    %119 = arith.mulf %115, %92 : vector<8x32xf32>
    %120 = arith.mulf %114, %118 : vector<8x32xf32>
    %121 = arith.addf %119, %120 : vector<8x32xf32>
    %122 = math.tanh %121 : vector<8x32xf32>
    %123 = arith.mulf %116, %122 : vector<8x32xf32>
    %124 = arith.index_cast %c3_i32 : i32 to index
    %c0_36 = arith.constant 0 : index
    %c0_37 = arith.constant 0 : index
    %125 = vector.load %arg5[%124, %c0_36, %c0_37] : memref<8x1x32xf32, #tpu.memory_space<vmem>>, vector<1x1x32xf32>
    %126 = vector.shape_cast %125 : vector<1x1x32xf32> to vector<1x32xf32>
    %127 = vector.broadcast %126 : vector<1x32xf32> to vector<8x32xf32>
    %128 = arith.mulf %123, %127 : vector<8x32xf32>
    %129 = arith.addf %100, %128 : vector<8x32xf32>
    %c4_i32 = arith.constant 4 : i32
    %130 = arith.index_cast %c4_i32 : i32 to index
    %c0_38 = arith.constant 0 : index
    %c0_39 = arith.constant 0 : index
    %131 = vector.load %arg8[%130, %c0_38, %c0_39] : memref<8x8x128xbf16, #tpu.memory_space<vmem>>, vector<1x8x128xbf16>
    %132 = vector.shape_cast %131 : vector<1x8x128xbf16> to vector<8x128xbf16>
    %133 = arith.extf %132 : vector<8x128xbf16> to vector<8x128xf32>
    %134 = arith.truncf %123 : vector<8x32xf32> to vector<8x32xbf16>
    %cst_40 = arith.constant dense<0.000000e+00> : vector<8x128xf32>
    %135 = tpu.matmul %134, %10, %cst_40 {dimension_numbers = #tpu.dot_dimension_numbers<[1], [0], [0], [1], [0, 0, 1, 1], [], []>} : vector<8x32xbf16>, vector<32x128xbf16>, vector<8x128xf32> -> vector<8x128xf32>
    %136 = arith.addf %133, %135 : vector<8x128xf32>
    %137 = vector.extract_strided_slice %136 {offsets = [0, 0], sizes = [8, 96], strides = [1, 1]} : vector<8x128xf32> to vector<8x96xf32>
    %138 = arith.negf %137 : vector<8x96xf32>
    %139 = math.exp %138 : vector<8x96xf32>
    %cst_41 = arith.constant 1.000000e+00 : f32
    %140 = vector.broadcast %cst_41 : f32 to vector<8x96xf32>
    %141 = arith.addf %140, %139 : vector<8x96xf32>
    %142 = arith.divf %140, %141 : vector<8x96xf32>
    %143 = vector.extract_strided_slice %142 {offsets = [0, 0], sizes = [8, 32], strides = [1, 1]} : vector<8x96xf32> to vector<8x32xf32>
    %144 = vector.extract_strided_slice %142 {offsets = [0, 32], sizes = [8, 32], strides = [1, 1]} : vector<8x96xf32> to vector<8x32xf32>
    %145 = vector.extract_strided_slice %142 {offsets = [0, 64], sizes = [8, 32], strides = [1, 1]} : vector<8x96xf32> to vector<8x32xf32>
    %146 = vector.extract_strided_slice %136 {offsets = [0, 96], sizes = [8, 32], strides = [1, 1]} : vector<8x128xf32> to vector<8x32xf32>
    %147 = math.tanh %146 : vector<8x32xf32>
    %148 = arith.mulf %144, %121 : vector<8x32xf32>
    %149 = arith.mulf %143, %147 : vector<8x32xf32>
    %150 = arith.addf %148, %149 : vector<8x32xf32>
    %151 = math.tanh %150 : vector<8x32xf32>
    %152 = arith.mulf %145, %151 : vector<8x32xf32>
    %153 = arith.index_cast %c4_i32 : i32 to index
    %c0_42 = arith.constant 0 : index
    %c0_43 = arith.constant 0 : index
    %154 = vector.load %arg5[%153, %c0_42, %c0_43] : memref<8x1x32xf32, #tpu.memory_space<vmem>>, vector<1x1x32xf32>
    %155 = vector.shape_cast %154 : vector<1x1x32xf32> to vector<1x32xf32>
    %156 = vector.broadcast %155 : vector<1x32xf32> to vector<8x32xf32>
    %157 = arith.mulf %152, %156 : vector<8x32xf32>
    %158 = arith.addf %129, %157 : vector<8x32xf32>
    %c5_i32 = arith.constant 5 : i32
    %159 = arith.index_cast %c5_i32 : i32 to index
    %c0_44 = arith.constant 0 : index
    %c0_45 = arith.constant 0 : index
    %160 = vector.load %arg8[%159, %c0_44, %c0_45] : memref<8x8x128xbf16, #tpu.memory_space<vmem>>, vector<1x8x128xbf16>
    %161 = vector.shape_cast %160 : vector<1x8x128xbf16> to vector<8x128xbf16>
    %162 = arith.extf %161 : vector<8x128xbf16> to vector<8x128xf32>
    %163 = arith.truncf %152 : vector<8x32xf32> to vector<8x32xbf16>
    %cst_46 = arith.constant dense<0.000000e+00> : vector<8x128xf32>
    %164 = tpu.matmul %163, %10, %cst_46 {dimension_numbers = #tpu.dot_dimension_numbers<[1], [0], [0], [1], [0, 0, 1, 1], [], []>} : vector<8x32xbf16>, vector<32x128xbf16>, vector<8x128xf32> -> vector<8x128xf32>
    %165 = arith.addf %162, %164 : vector<8x128xf32>
    %166 = vector.extract_strided_slice %165 {offsets = [0, 0], sizes = [8, 96], strides = [1, 1]} : vector<8x128xf32> to vector<8x96xf32>
    %167 = arith.negf %166 : vector<8x96xf32>
    %168 = math.exp %167 : vector<8x96xf32>
    %cst_47 = arith.constant 1.000000e+00 : f32
    %169 = vector.broadcast %cst_47 : f32 to vector<8x96xf32>
    %170 = arith.addf %169, %168 : vector<8x96xf32>
    %171 = arith.divf %169, %170 : vector<8x96xf32>
    %172 = vector.extract_strided_slice %171 {offsets = [0, 0], sizes = [8, 32], strides = [1, 1]} : vector<8x96xf32> to vector<8x32xf32>
    %173 = vector.extract_strided_slice %171 {offsets = [0, 32], sizes = [8, 32], strides = [1, 1]} : vector<8x96xf32> to vector<8x32xf32>
    %174 = vector.extract_strided_slice %171 {offsets = [0, 64], sizes = [8, 32], strides = [1, 1]} : vector<8x96xf32> to vector<8x32xf32>
    %175 = vector.extract_strided_slice %165 {offsets = [0, 96], sizes = [8, 32], strides = [1, 1]} : vector<8x128xf32> to vector<8x32xf32>
    %176 = math.tanh %175 : vector<8x32xf32>
    %177 = arith.mulf %173, %150 : vector<8x32xf32>
    %178 = arith.mulf %172, %176 : vector<8x32xf32>
    %179 = arith.addf %177, %178 : vector<8x32xf32>
    %180 = math.tanh %179 : vector<8x32xf32>
    %181 = arith.mulf %174, %180 : vector<8x32xf32>
    %182 = arith.index_cast %c5_i32 : i32 to index
    %c0_48 = arith.constant 0 : index
    %c0_49 = arith.constant 0 : index
    %183 = vector.load %arg5[%182, %c0_48, %c0_49] : memref<8x1x32xf32, #tpu.memory_space<vmem>>, vector<1x1x32xf32>
    %184 = vector.shape_cast %183 : vector<1x1x32xf32> to vector<1x32xf32>
    %185 = vector.broadcast %184 : vector<1x32xf32> to vector<8x32xf32>
    %186 = arith.mulf %181, %185 : vector<8x32xf32>
    %187 = arith.addf %158, %186 : vector<8x32xf32>
    %c6_i32 = arith.constant 6 : i32
    %188 = arith.index_cast %c6_i32 : i32 to index
    %c0_50 = arith.constant 0 : index
    %c0_51 = arith.constant 0 : index
    %189 = vector.load %arg8[%188, %c0_50, %c0_51] : memref<8x8x128xbf16, #tpu.memory_space<vmem>>, vector<1x8x128xbf16>
    %190 = vector.shape_cast %189 : vector<1x8x128xbf16> to vector<8x128xbf16>
    %191 = arith.extf %190 : vector<8x128xbf16> to vector<8x128xf32>
    %192 = arith.truncf %181 : vector<8x32xf32> to vector<8x32xbf16>
    %cst_52 = arith.constant dense<0.000000e+00> : vector<8x128xf32>
    %193 = tpu.matmul %192, %10, %cst_52 {dimension_numbers = #tpu.dot_dimension_numbers<[1], [0], [0], [1], [0, 0, 1, 1], [], []>} : vector<8x32xbf16>, vector<32x128xbf16>, vector<8x128xf32> -> vector<8x128xf32>
    %194 = arith.addf %191, %193 : vector<8x128xf32>
    %195 = vector.extract_strided_slice %194 {offsets = [0, 0], sizes = [8, 96], strides = [1, 1]} : vector<8x128xf32> to vector<8x96xf32>
    %196 = arith.negf %195 : vector<8x96xf32>
    %197 = math.exp %196 : vector<8x96xf32>
    %cst_53 = arith.constant 1.000000e+00 : f32
    %198 = vector.broadcast %cst_53 : f32 to vector<8x96xf32>
    %199 = arith.addf %198, %197 : vector<8x96xf32>
    %200 = arith.divf %198, %199 : vector<8x96xf32>
    %201 = vector.extract_strided_slice %200 {offsets = [0, 0], sizes = [8, 32], strides = [1, 1]} : vector<8x96xf32> to vector<8x32xf32>
    %202 = vector.extract_strided_slice %200 {offsets = [0, 32], sizes = [8, 32], strides = [1, 1]} : vector<8x96xf32> to vector<8x32xf32>
    %203 = vector.extract_strided_slice %200 {offsets = [0, 64], sizes = [8, 32], strides = [1, 1]} : vector<8x96xf32> to vector<8x32xf32>
    %204 = vector.extract_strided_slice %194 {offsets = [0, 96], sizes = [8, 32], strides = [1, 1]} : vector<8x128xf32> to vector<8x32xf32>
    %205 = math.tanh %204 : vector<8x32xf32>
    %206 = arith.mulf %202, %179 : vector<8x32xf32>
    %207 = arith.mulf %201, %205 : vector<8x32xf32>
    %208 = arith.addf %206, %207 : vector<8x32xf32>
    %209 = math.tanh %208 : vector<8x32xf32>
    %210 = arith.mulf %203, %209 : vector<8x32xf32>
    %211 = arith.index_cast %c6_i32 : i32 to index
    %c0_54 = arith.constant 0 : index
    %c0_55 = arith.constant 0 : index
    %212 = vector.load %arg5[%211, %c0_54, %c0_55] : memref<8x1x32xf32, #tpu.memory_space<vmem>>, vector<1x1x32xf32>
    %213 = vector.shape_cast %212 : vector<1x1x32xf32> to vector<1x32xf32>
    %214 = vector.broadcast %213 : vector<1x32xf32> to vector<8x32xf32>
    %215 = arith.mulf %210, %214 : vector<8x32xf32>
    %216 = arith.addf %187, %215 : vector<8x32xf32>
    %c7_i32 = arith.constant 7 : i32
    %217 = arith.index_cast %c7_i32 : i32 to index
    %c0_56 = arith.constant 0 : index
    %c0_57 = arith.constant 0 : index
    %218 = vector.load %arg8[%217, %c0_56, %c0_57] : memref<8x8x128xbf16, #tpu.memory_space<vmem>>, vector<1x8x128xbf16>
    %219 = vector.shape_cast %218 : vector<1x8x128xbf16> to vector<8x128xbf16>
    %220 = arith.extf %219 : vector<8x128xbf16> to vector<8x128xf32>
    %221 = arith.truncf %210 : vector<8x32xf32> to vector<8x32xbf16>
    %cst_58 = arith.constant dense<0.000000e+00> : vector<8x128xf32>
    %222 = tpu.matmul %221, %10, %cst_58 {dimension_numbers = #tpu.dot_dimension_numbers<[1], [0], [0], [1], [0, 0, 1, 1], [], []>} : vector<8x32xbf16>, vector<32x128xbf16>, vector<8x128xf32> -> vector<8x128xf32>
    %223 = arith.addf %220, %222 : vector<8x128xf32>
    %224 = vector.extract_strided_slice %223 {offsets = [0, 0], sizes = [8, 96], strides = [1, 1]} : vector<8x128xf32> to vector<8x96xf32>
    %225 = arith.negf %224 : vector<8x96xf32>
    %226 = math.exp %225 : vector<8x96xf32>
    %cst_59 = arith.constant 1.000000e+00 : f32
    %227 = vector.broadcast %cst_59 : f32 to vector<8x96xf32>
    %228 = arith.addf %227, %226 : vector<8x96xf32>
    %229 = arith.divf %227, %228 : vector<8x96xf32>
    %230 = vector.extract_strided_slice %229 {offsets = [0, 0], sizes = [8, 32], strides = [1, 1]} : vector<8x96xf32> to vector<8x32xf32>
    %231 = vector.extract_strided_slice %229 {offsets = [0, 32], sizes = [8, 32], strides = [1, 1]} : vector<8x96xf32> to vector<8x32xf32>
    %232 = vector.extract_strided_slice %229 {offsets = [0, 64], sizes = [8, 32], strides = [1, 1]} : vector<8x96xf32> to vector<8x32xf32>
    %233 = vector.extract_strided_slice %223 {offsets = [0, 96], sizes = [8, 32], strides = [1, 1]} : vector<8x128xf32> to vector<8x32xf32>
    %234 = math.tanh %233 : vector<8x32xf32>
    %235 = arith.mulf %231, %208 : vector<8x32xf32>
    %236 = arith.mulf %230, %234 : vector<8x32xf32>
    %237 = arith.addf %235, %236 : vector<8x32xf32>
    %238 = math.tanh %237 : vector<8x32xf32>
    %239 = arith.mulf %232, %238 : vector<8x32xf32>
    %240 = arith.index_cast %c7_i32 : i32 to index
    %c0_60 = arith.constant 0 : index
    %c0_61 = arith.constant 0 : index
    %241 = vector.load %arg5[%240, %c0_60, %c0_61] : memref<8x1x32xf32, #tpu.memory_space<vmem>>, vector<1x1x32xf32>
    %242 = vector.shape_cast %241 : vector<1x1x32xf32> to vector<1x32xf32>
    %243 = vector.broadcast %242 : vector<1x32xf32> to vector<8x32xf32>
    %244 = arith.mulf %239, %243 : vector<8x32xf32>
    %245 = arith.addf %216, %244 : vector<8x32xf32>
    %c8_i32 = arith.constant 8 : i32
    %cst_62 = arith.constant dense<0.000000e+00> : vector<8xf32>
    %246 = vector.multi_reduction <add>, %245, %cst_62 [1] : vector<8x32xf32> to vector<8xf32>
    %247 = vector.shape_cast %246 : vector<8xf32> to vector<8x1xf32>
    %c0_63 = arith.constant 0 : index
    %c0_64 = arith.constant 0 : index
    %248 = vector.load %arg6[%c0_63, %c0_64] : memref<1x1xf32, #tpu.memory_space<vmem>>, vector<1x1xf32>
    %249 = vector.broadcast %248 : vector<1x1xf32> to vector<8x1xf32>
    %250 = arith.addf %247, %249 : vector<8x1xf32>
    %c0_65 = arith.constant 0 : index
    %c0_66 = arith.constant 0 : index
    %251 = vector.load %arg7[%c0_65, %c0_66] : memref<8x1xf32, #tpu.memory_space<vmem>>, vector<8x1xf32>
    tpu.vector_store %arg7[%c0_65, %c0_66], %250 {strides = array<i32>} : memref<8x1xf32, #tpu.memory_space<vmem>>, vector<8x1xf32>,
    return
  }
  func.func @transform_0(%arg0: i32) -> (i32, i32, i32) {
    %c0_i32 = arith.constant 0 : i32
    %c0_i32_0 = arith.constant 0 : i32
    %c0_i32_1 = arith.constant 0 : i32
    return %c0_i32, %arg0, %c0_i32_0 : i32, i32, i32
  }
  func.func @transform_1(%arg0: i32) -> (i32, i32) {
    %c0_i32 = arith.constant 0 : i32
    %c0_i32_0 = arith.constant 0 : i32
    %c0_i32_1 = arith.constant 0 : i32
    return %c0_i32, %c0_i32_0 : i32, i32
  }
  func.func @transform_2(%arg0: i32) -> (i32, i32) {
    %c0_i32 = arith.constant 0 : i32
    %c0_i32_0 = arith.constant 0 : i32
    %c0_i32_1 = arith.constant 0 : i32
    return %c0_i32, %c0_i32_0 : i32, i32
  }
  func.func @transform_3(%arg0: i32) -> (i32, i32) {
    %c0_i32 = arith.constant 0 : i32
    %c0_i32_0 = arith.constant 0 : i32
    %c0_i32_1 = arith.constant 0 : i32
    return %c0_i32, %c0_i32_0 : i32, i32
  }
  func.func @transform_4(%arg0: i32) -> (i32, i32, i32) {
    %c0_i32 = arith.constant 0 : i32
    %c0_i32_0 = arith.constant 0 : i32
    %c0_i32_1 = arith.constant 0 : i32
    %c0_i32_2 = arith.constant 0 : i32
    return %c0_i32, %c0_i32_0, %c0_i32_1 : i32, i32, i32
  }
  func.func @transform_5(%arg0: i32) -> (i32, i32) {
    %c0_i32 = arith.constant 0 : i32
    %c0_i32_0 = arith.constant 0 : i32
    %c0_i32_1 = arith.constant 0 : i32
    return %c0_i32, %c0_i32_0 : i32, i32
  }
  func.func @transform_6(%arg0: i32) -> (i32, i32) {
    %c0_i32 = arith.constant 0 : i32
    %c0_i32_0 = arith.constant 0 : i32
    return %arg0, %c0_i32 : i32, i32
  }
}

</mosaic_0001>

<bundles_post_ra>
// kernel: lstm_model_forward.3
= control target key start
LH: loop header
LB: loop body
LE: loop exit
PB: predicated region body
PF: predicated region fallthrough
CT: control target
= control target key end

     0   :  { %v1148_v1 = vmov 0.0   ;;  %vm1149_vm0 = vmmov 0   ;;  %vm77_vm1 = vcmask 261120   ;;  %v1150_v7 = vmov 0   ;;  %s1152_s9 = smov 64   ;;  %s1394_s1 = inlined_call_operand.vmem [shape: bf16[32,128], index: 1, kind: input, shape index: {}]   ;;  %s1395_s0 = inlined_call_operand.vmem [shape: bf16[8,8,32], index: 0, kind: input, shape index: {}]   ;;  %s1396_s2 = inlined_call_operand.vmem [shape: bf16[32,128], index: 2, kind: input, shape index: {}]   ;;  %s1397_s3 = inlined_call_operand.vmem [shape: f32[1,128], index: 3, kind: input, shape index: {}]   ;;  %s1398_s4 = inlined_call_operand.vmem [shape: f32[8,1,32], index: 4, kind: input, shape index: {}]   ;;  %s1399_s5 = inlined_call_operand.<no memory space> [shape: f32[1,1], index: 5, kind: input, shape index: {}]   ;;  %s1400_s6 = inlined_call_operand.vmem [shape: f32[8,1], index: 6, kind: output, shape index: {}]  }
   0x1   :  { %v1076_v0 = vld [vmem:[%s1394_s1] sm:$0xff]   ;;  %1007 = vmatprep.subr.bf16.mxu1 %v1148_v1  ;;  %1011 = vmatprep.mubr.msk.bf16.mxu1 %vm1149_vm0, %v1148_v1  ;;  %v1077_v2 = vld [vmem:[%s1394_s1 + $0x8] sm:$0xff]   ;;  %v1082_v57 = vld [vmem:[%s1395_s0 + $0x10] sm:$0xff]   ;;  %vm892_vm2 = vcmask 7168  }
   0x2   :  { %995 = vmatprep.subr.bf16.mxu0 %v1076_v0  ;;  %v1078_v3 = vld [vmem:[%s1395_s0] sm:$0xff]   ;;  %v1079_v4 = vld [vmem:[%s1395_s0 + $0x8] sm:$0xff]   ;;  %v1083_v58 = vld [vmem:[%s1395_s0 + $0x18] sm:$0xff]  }
   0x3   :  { %996 = vmatpush3.bf16.msra.mxu0 %v1076_v0  ;;  %999 = vmatprep.mubr.msk.bf16.mxu0 %vm77_vm1, %v1078_v3  ;;  %v1207_v5 = vld [vmem:[%s1396_s2] sm:$0xff]   ;;  %v1212_v6 = vld [vmem:[%s1396_s2 + $0x8] sm:$0xff]  }
   0x4   :  { %997 = vmatprep.subr.bf16.mxu0 %v1077_v2  ;;  %1008 = vmatpush3.bf16.msra.mxu1 %v1207_v5  ;;  %v1233_v9 = vld [vmem:[%s1397_s3] ss:$0 sm:$0xff]  ;;  %s1151_s3 = smov 32  }
   0x5   :  { %1009 = vmatprep.subr.bf16.mxu1 %v1148_v1 }
   0x7   :  { %998 = vmatpush3.bf16.msra.mxu0 %v1077_v2 }
   0x8   :  { %1023 = vmatprep.subr.bf16.mxu0 %v1148_v1  ;;  %1010 = vmatpush3.bf16.msra.mxu1 %v1212_v6 }
   0x9   :  { %1015 = vmatprep.subr.bf16.mxu1 %v1148_v1 }
   0xa   :  { %1000 = vmatmul.mubr.msk.bf16.vlgmr.msra.gmra.mrb[0].mxu0 %vm77_vm1, %v1079_v4 }
   0xb   :  { %1024 = vmatpush3.bf16.msra.mxu0 %v1207_v5  ;;  %1012 = vmatmul.mubr.bf16.vlgmr.msra.gmra.mrb[0].mxu1 %v1150_v7 }
   0xc   :  { %1025 = vmatprep.subr.bf16.mxu0 %v1148_v1  ;;  %1016 = vmatpush3.bf16.msra.mxu1 %v1207_v5 }
   0xd   :  { %1019 = vmatprep.mubr.msk.bf16.mxu1 %vm1149_vm0, %v1148_v1  ;;  %1017 = vmatprep.subr.bf16.mxu1 %v1148_v1 }
   0xe   :  { %1003 = vmatprep.mubr.msk.bf16.mxu0 %vm77_vm1, %v1082_v57 }
   0xf   :  { %1026 = vmatpush3.bf16.msra.mxu0 %v1212_v6 }
  0x10   :  { %1039 = vmatprep.subr.bf16.mxu0 %v1148_v1  ;;  %1018 = vmatpush3.bf16.msra.mxu1 %v1212_v6 }
  0x11   :  { %1031 = vmatprep.subr.bf16.mxu1 %v1148_v1 }
  0x12   :  { %1004 = vmatmul.mubr.msk.bf16.gmra.mrb[4].mxu0 %vm77_vm1, %v1083_v58 }
  0x13   :  { %1027 = vmatprep.mubr.msk.bf16.mxu0 %vm1149_vm0, %v1148_v1 }
  0xdd   :  { %v1001_v8 = vpop.f32.mrb[0].mxu0 }
  0xde   :  { %v124_v10 = vpop.f32.mrb[1].mxu0  ;;  %v133_v12 = vadd.f32 %v1001_v8, %v1233_v9  ;;  %v226_v15 = vpop.f32.mrb[0].mxu1 }
  0xdf   :  { %v1002_v11 = vpop.f32.mrb[2].mxu0  ;;  %v125_v16 = vadd.f32 %v1233_v9, %v124_v10  ;;  %v1013_v18 = vpop.f32.mrb[1].mxu1 }
  0xe0   :  { %v136_v13 = vadd.f32 %v1002_v11, %v1233_v9  ;;  %v127_v14 = vpop.f32.mrb[3].mxu0  ;;  %v229_v20 = vpop.f32.mrb[2].mxu1 }
  0xe1   :  { %v128_v17 = vadd.f32 %v1233_v9, %v127_v14  ;;  %v1014_v22 = vpop.f32.mrb[3].mxu1 }
  0xe2   :  { %v950_v19 = vpack.c.bf16 %v136_v13, %v133_v12 }
  0xe3   :  { %v945_v21 = vpack.c.bf16 %v128_v17, %v125_v16 }
  0xe4   :  { %962 = vst [vmem:[#allocation2 + $0x8] sm:$0xff] %v950_v19  }
  0xe5   :  { %946 = vst [vmem:[#allocation2] sm:$0xff] %v945_v21   ;;  %v1005_v63 = vpop.f32.mrb[4].mxu0 }
  0xe6   :  { %v149_v0 = vadd.f32 %v1005_v63, %v1233_v9  ;;  %v140_v2 = vpop.f32.mrb[5].mxu0 }
  0xe7   :  { %v141_v3 = vadd.f32 %v1233_v9, %v140_v2  ;;  %v1006_v4 = vpop.f32.mrb[6].mxu0 }
  0xe8   :  { %v152_v7 = vadd.f32 %v1006_v4, %v1233_v9  ;;  %v143_v8 = vpop.f32.mrb[7].mxu0 }
  0xe9   :  { %v144_v10 = vadd.f32 %v1233_v9, %v143_v8 }
  0xea   :  { %v960_v11 = vpack.c.bf16 %v152_v7, %v149_v0 }
  0xeb   :  { %v955_v12 = vpack.c.bf16 %v144_v10, %v141_v3  ;;  %v356_v14 = vld [vmem:[#allocation2 + $0x8] sm:$0xff]  }
  0xec   :  { %v175_v23 = vld [vmem:[#allocation2] sm:$0xff]   ;;  %964 = vst [vmem:[#allocation2 + $0x18] sm:$0xff] %v960_v11   ;;  %v357_v9 = vunpack.c.l.bf16 %v356_v14 }
  0xed   :  { %v176_v24 = vunpack.c.l.bf16 %v175_v23  ;;  %v270_v41 = vunpack.c.h.bf16 %v175_v23  ;;  %963 = vst [vmem:[#allocation2 + $0x10] sm:$0xff] %v955_v12  }
  0xef   :  { %v232_v25 = vadd.f32 %v226_v15, %v176_v24 }
  0xf1   :  { %1084 = vtanh.f32 %v232_v25  ;;  %v911_v27 = vmul.f32 -1.442695, %v232_v25 }
  0xf3   :  { %1086 = vpow2.f32 %v911_v27 }
  0xf4   :  { %v530_v57 = vld [vmem:[#allocation2 + $0x10] sm:$0xff]  }
  0xf5   :  { %v531_v58 = vunpack.c.l.bf16 %v530_v57 }
  0xfb   :  { %v1085_v26 = vpop.eup %1084 }
  0xfc   :  { %242 = vrot.lane.b32.xlu0 %v1085_v26, %s1151_s3 }
  0xfd   :  { %v1087_v28 = vpop.eup %1086 }
  0xfe   :  { %v236_v29 = vadd.f32 1.0, %v1087_v28 }
 0x100   :  { %1088 = vrcp.f32 %v236_v29 }
 0x10a   :  { %v1089_v30 = vpop.eup %1088 }
 0x10b   :  { %v240_v33 = vmul.f32 0.0, %v1089_v30 }
 0x16e   :  { %v243_v31 = vpop.permute.xlu0 %242 }
 0x16f   :  { %v245_v32 = vmul.f32 %v1089_v30, %v243_v31 }
 0x171   :  { %247 = vrot.lane.b32.xlu0 %v245_v32, %s1151_s3 }
 0x1e3   :  { %v248_v34 = vpop.permute.xlu0 %247 }
 0x1e4   :  { %v250_v35 = vadd.f32 %v248_v34, %v240_v33 }
 0x1e6   :  { %1090 = vtanh.f32 %v250_v35 }
 0x1f0   :  { %v1091_v36 = vpop.eup %1090 }
 0x1f1   :  { %253 = vrot.lane.b32.xlu1 %v1091_v36, %s1151_s3 }
 0x263   :  { %v254_v37 = vpop.permute.xlu1 %253 }
 0x264   :  { %v1242_v38 = vmul.f32 %v1089_v30, %v254_v37 }
 0x266   :  { %v271_v39 = vpack.c.bf16 %v1242_v38, %v1242_v38 }
 0x268   :  { %273 = vrot.lane.b32.xlu1 %v271_v39, %s1152_s9 }
 0x2da   :  { %v274_v40 = vpop.permute.xlu1 %273 }
 0x2db   :  { %1020 = vmatmul.mubr.msk.bf16.vlgmr.msra.gmra.mrb[4].mxu1 %vm77_vm1, %v274_v40 }
 0x2dc   :  { %1032 = vmatpush3.bf16.msra.mxu1 %v1207_v5  ;;  %1035 = vmatprep.mubr.msk.bf16.mxu1 %vm1149_vm0, %v1148_v1 }
 0x2dd   :  { %1033 = vmatprep.subr.bf16.mxu1 %v1148_v1 }
 0x2e0   :  { %1034 = vmatpush3.bf16.msra.mxu1 %v1212_v6 }
 0x2e1   :  { %1047 = vmatprep.subr.bf16.mxu1 %v1148_v1 }
 0x3ae   :  { %v312_v42 = vpop.f32.mrb[4].mxu1 }
 0x3af   :  { %v318_v43 = vadd.f32 %v312_v42, %v270_v41  ;;  %v1021_v44 = vpop.f32.mrb[5].mxu1 }
 0x3b0   :  { %v315_v45 = vpop.f32.mrb[6].mxu1 }
 0x3b1   :  { %1092 = vtanh.f32 %v318_v43  ;;  %v1022_v46 = vpop.f32.mrb[7].mxu1  ;;  %v914_v48 = vmul.f32 -1.442695, %v318_v43 }
 0x3b3   :  { %1094 = vpow2.f32 %v914_v48 }
 0x3bb   :  { %v1093_v47 = vpop.eup %1092 }
 0x3bc   :  { %328 = vrot.lane.b32.xlu0 %v1093_v47, %s1151_s3 }
 0x3bd   :  { %v1095_v49 = vpop.eup %1094 }
 0x3be   :  { %v322_v50 = vadd.f32 1.0, %v1095_v49 }
 0x3c0   :  { %1096 = vrcp.f32 %v322_v50 }
 0x3ca   :  { %v1097_v51 = vpop.eup %1096 }
 0x3cb   :  { %v326_v54 = vmul.f32 %v1097_v51, %v250_v35  ;;  %v444_v35 = vunpack.c.h.bf16 %v356_v14 }
 0x42e   :  { %v329_v52 = vpop.permute.xlu0 %328 }
 0x42f   :  { %v331_v53 = vmul.f32 %v1097_v51, %v329_v52 }
 0x431   :  { %333 = vrot.lane.b32.xlu1 %v331_v53, %s1151_s3 }
 0x4a3   :  { %v334_v55 = vpop.permute.xlu1 %333 }
 0x4a4   :  { %v336_v56 = vadd.f32 %v334_v55, %v326_v54 }
 0x4a6   :  { %1098 = vtanh.f32 %v336_v56 }
 0x4b0   :  { %v1099_v59 = vpop.eup %1098 }
 0x4b1   :  { %339 = vrot.lane.b32.xlu0 %v1099_v59, %s1151_s3 }
 0x523   :  { %v340_v60 = vpop.permute.xlu0 %339 }
 0x524   :  { %v1267_v61 = vmul.f32 %v1097_v51, %v340_v60 }
 0x526   :  { %v358_v62 = vpack.c.bf16 %v1267_v61, %v1267_v61 }
 0x528   :  { %360 = vrot.lane.b32.xlu1 %v358_v62, %s1152_s9 }
 0x59a   :  { %v361_v13 = vpop.permute.xlu1 %360 }
 0x59b   :  { %1028 = vmatmul.mubr.msk.bf16.vlgmr.msra.gmra.mrb[8].mxu0 %vm77_vm1, %v361_v13 }
 0x59c   :  { %1040 = vmatpush3.bf16.msra.mxu0 %v1207_v5  ;;  %1043 = vmatprep.mubr.msk.bf16.mxu0 %vm1149_vm0, %v1148_v1 }
 0x59d   :  { %1041 = vmatprep.subr.bf16.mxu0 %v1148_v1 }
 0x5a0   :  { %1042 = vmatpush3.bf16.msra.mxu0 %v1212_v6 }
 0x5a1   :  { %1055 = vmatprep.subr.bf16.mxu0 %v1148_v1 }
 0x66e   :  { %v399_v15 = vpop.f32.mrb[8].mxu0 }
 0x66f   :  { %v405_v16 = vadd.f32 %v399_v15, %v357_v9  ;;  %v1029_v17 = vpop.f32.mrb[9].mxu0 }
 0x670   :  { %v402_v18 = vpop.f32.mrb[10].mxu0 }
 0x671   :  { %1100 = vtanh.f32 %v405_v16  ;;  %v1030_v19 = vpop.f32.mrb[11].mxu0  ;;  %v918_v21 = vmul.f32 -1.442695, %v405_v16 }
 0x672   :  { %v618_v19 = vunpack.c.h.bf16 %v530_v57 }
 0x673   :  { %1102 = vpow2.f32 %v918_v21 }
 0x67b   :  { %v1101_v20 = vpop.eup %1100 }
 0x67c   :  { %415 = vrot.lane.b32.xlu0 %v1101_v20, %s1151_s3 }
 0x67d   :  { %v1103_v22 = vpop.eup %1102 }
 0x67e   :  { %v409_v23 = vadd.f32 1.0, %v1103_v22 }
 0x680   :  { %1104 = vrcp.f32 %v409_v23 }
 0x68a   :  { %v1105_v24 = vpop.eup %1104 }
 0x68b   :  { %v413_v27 = vmul.f32 %v1105_v24, %v336_v56 }
 0x6ee   :  { %v416_v25 = vpop.permute.xlu0 %415 }
 0x6ef   :  { %v418_v26 = vmul.f32 %v1105_v24, %v416_v25 }
 0x6f1   :  { %420 = vrot.lane.b32.xlu1 %v418_v26, %s1151_s3 }
 0x763   :  { %v421_v28 = vpop.permute.xlu1 %420 }
 0x764   :  { %v423_v29 = vadd.f32 %v421_v28, %v413_v27 }
 0x766   :  { %1106 = vtanh.f32 %v423_v29 }
 0x770   :  { %v1107_v30 = vpop.eup %1106 }
 0x771   :  { %426 = vrot.lane.b32.xlu0 %v1107_v30, %s1151_s3 }
 0x7e3   :  { %v427_v31 = vpop.permute.xlu0 %426 }
 0x7e4   :  { %v1286_v32 = vmul.f32 %v1105_v24, %v427_v31 }
 0x7e6   :  { %v445_v33 = vpack.c.bf16 %v1286_v32, %v1286_v32 }
 0x7e8   :  { %447 = vrot.lane.b32.xlu1 %v445_v33, %s1152_s9 }
 0x85a   :  { %v448_v34 = vpop.permute.xlu1 %447 }
 0x85b   :  { %1036 = vmatmul.mubr.msk.bf16.vlgmr.msra.gmra.mrb[8].mxu1 %vm77_vm1, %v448_v34 }
 0x85c   :  { %1048 = vmatpush3.bf16.msra.mxu1 %v1207_v5  ;;  %1051 = vmatprep.mubr.msk.bf16.mxu1 %vm1149_vm0, %v1148_v1 }
 0x85d   :  { %1049 = vmatprep.subr.bf16.mxu1 %v1148_v1 }
 0x860   :  { %1050 = vmatpush3.bf16.msra.mxu1 %v1212_v6 }
 0x861   :  { %1063 = vmatprep.subr.bf16.mxu1 %v1148_v1 }
 0x92e   :  { %v486_v36 = vpop.f32.mrb[8].mxu1 }
 0x92f   :  { %v492_v37 = vadd.f32 %v486_v36, %v444_v35  ;;  %v1037_v39 = vpop.f32.mrb[9].mxu1 }
 0x930   :  { %v489_v40 = vpop.f32.mrb[10].mxu1  ;;  %v704_v39 = vld [vmem:[#allocation2 + $0x18] sm:$0xff]  }
 0x931   :  { %1108 = vtanh.f32 %v492_v37  ;;  %v1038_v41 = vpop.f32.mrb[11].mxu1  ;;  %v922_v43 = vmul.f32 -1.442695, %v492_v37  ;;  %v705_v40 = vunpack.c.l.bf16 %v704_v39 }
 0x933   :  { %1110 = vpow2.f32 %v922_v43 }
 0x93b   :  { %v1109_v42 = vpop.eup %1108 }
 0x93c   :  { %502 = vrot.lane.b32.xlu0 %v1109_v42, %s1151_s3 }
 0x93d   :  { %v1111_v44 = vpop.eup %1110 }
 0x93e   :  { %v496_v45 = vadd.f32 1.0, %v1111_v44 }
 0x940   :  { %1112 = vrcp.f32 %v496_v45 }
 0x94a   :  { %v1113_v46 = vpop.eup %1112 }
 0x94b   :  { %v500_v49 = vmul.f32 %v1113_v46, %v423_v29 }
 0x9ae   :  { %v503_v47 = vpop.permute.xlu0 %502 }
 0x9af   :  { %v505_v48 = vmul.f32 %v1113_v46, %v503_v47 }
 0x9b1   :  { %507 = vrot.lane.b32.xlu1 %v505_v48, %s1151_s3 }
 0xa23   :  { %v508_v50 = vpop.permute.xlu1 %507 }
 0xa24   :  { %v510_v51 = vadd.f32 %v508_v50, %v500_v49 }
 0xa26   :  { %1114 = vtanh.f32 %v510_v51 }
 0xa30   :  { %v1115_v52 = vpop.eup %1114 }
 0xa31   :  { %513 = vrot.lane.b32.xlu0 %v1115_v52, %s1151_s3 }
 0xaa3   :  { %v514_v53 = vpop.permute.xlu0 %513 }
 0xaa4   :  { %v1301_v54 = vmul.f32 %v1113_v46, %v514_v53 }
 0xaa6   :  { %v532_v55 = vpack.c.bf16 %v1301_v54, %v1301_v54 }
 0xaa8   :  { %534 = vrot.lane.b32.xlu1 %v532_v55, %s1152_s9 }
 0xb1a   :  { %v535_v56 = vpop.permute.xlu1 %534 }
 0xb1b   :  { %1044 = vmatmul.mubr.msk.bf16.vlgmr.msra.gmra.mrb[12].mxu0 %vm77_vm1, %v535_v56 }
 0xb1c   :  { %1056 = vmatpush3.bf16.msra.mxu0 %v1207_v5  ;;  %1059 = vmatprep.mubr.msk.bf16.mxu0 %vm1149_vm0, %v1148_v1 }
 0xb1d   :  { %1057 = vmatprep.subr.bf16.mxu0 %v1148_v1 }
 0xb20   :  { %1058 = vmatpush3.bf16.msra.mxu0 %v1212_v6 }
 0xbee   :  { %v573_v59 = vpop.f32.mrb[12].mxu0 }
 0xbef   :  { %v579_v60 = vadd.f32 %v573_v59, %v531_v58  ;;  %v1045_v62 = vpop.f32.mrb[13].mxu0 }
 0xbf0   :  { %v576_v63 = vpop.f32.mrb[14].mxu0 }
 0xbf1   :  { %1116 = vtanh.f32 %v579_v60  ;;  %v1046_v0 = vpop.f32.mrb[15].mxu0  ;;  %v926_v3 = vmul.f32 -1.442695, %v579_v60  ;;  %v792_v63 = vunpack.c.h.bf16 %v704_v39 }
 0xbf3   :  { %1118 = vpow2.f32 %v926_v3 }
 0xbfb   :  { %v1117_v2 = vpop.eup %1116 }
 0xbfc   :  { %589 = vrot.lane.b32.xlu0 %v1117_v2, %s1151_s3 }
 0xbfd   :  { %v1119_v4 = vpop.eup %1118 }
 0xbfe   :  { %v583_v7 = vadd.f32 1.0, %v1119_v4 }
 0xc00   :  { %1120 = vrcp.f32 %v583_v7 }
 0xc0a   :  { %v1121_v8 = vpop.eup %1120 }
 0xc0b   :  { %v587_v12 = vmul.f32 %v1121_v8, %v510_v51 }
 0xc6e   :  { %v590_v10 = vpop.permute.xlu0 %589 }
 0xc6f   :  { %v592_v11 = vmul.f32 %v1121_v8, %v590_v10  ;;  %v912_v10 = vld [vmem:[%s1398_s4] ss:$0 sm:$0xff] }
 0xc71   :  { %594 = vrot.lane.b32.xlu1 %v592_v11, %s1151_s3  ;;  %v920_v11 = vld [vmem:[%s1398_s4 + $0x2] ss:$0 sm:$0xff] }
 0xce3   :  { %v595_v13 = vpop.permute.xlu1 %594 }
 0xce4   :  { %v597_v14 = vadd.f32 %v595_v13, %v587_v12  ;;  %v928_v12 = vld [vmem:[%s1398_s4 + $0x4] ss:$0 sm:$0xff]  ;;  %v936_v13 = vld [vmem:[%s1398_s4 + $0x6] ss:$0 sm:$0xff] }
 0xce6   :  { %1122 = vtanh.f32 %v597_v14 }
 0xcf0   :  { %v1123_v9 = vpop.eup %1122 }
 0xcf1   :  { %600 = vrot.lane.b32.xlu0 %v1123_v9, %s1151_s3 }
 0xd63   :  { %v601_v15 = vpop.permute.xlu0 %600 }
 0xd64   :  { %v1315_v16 = vmul.f32 %v1121_v8, %v601_v15 }
 0xd66   :  { %v619_v17 = vpack.c.bf16 %v1315_v16, %v1315_v16 }
 0xd68   :  { %621 = vrot.lane.b32.xlu1 %v619_v17, %s1152_s9 }
 0xdda   :  { %v622_v18 = vpop.permute.xlu1 %621 }
 0xddb   :  { %1052 = vmatmul.mubr.msk.bf16.vlgmr.msra.gmra.mrb[12].mxu1 %vm77_vm1, %v622_v18 }
 0xddc   :  { %1064 = vmatpush3.bf16.msra.mxu1 %v1207_v5  ;;  %1067 = vmatprep.mubr.msk.bf16.mxu1 %vm1149_vm0, %v1148_v1 }
 0xddd   :  { %1065 = vmatprep.subr.bf16.mxu1 %v1148_v1 }
 0xde0   :  { %1066 = vmatpush3.bf16.msra.mxu1 %v1212_v6 }
 0xeae   :  { %v660_v20 = vpop.f32.mrb[12].mxu1 }
 0xeaf   :  { %v666_v21 = vadd.f32 %v660_v20, %v618_v19  ;;  %v1053_v22 = vpop.f32.mrb[13].mxu1  ;;  %v916_v20 = vld [vmem:[%s1398_s4 + $0x1] ss:$0 sm:$0xff] }
 0xeb0   :  { %v663_v23 = vpop.f32.mrb[14].mxu1  ;;  %v924_v22 = vld [vmem:[%s1398_s4 + $0x3] ss:$0 sm:$0xff] }
 0xeb1   :  { %1124 = vtanh.f32 %v666_v21  ;;  %v1054_v24 = vpop.f32.mrb[15].mxu1  ;;  %v930_v26 = vmul.f32 -1.442695, %v666_v21  ;;  %v940_v21 = vld [vmem:[%s1398_s4 + $0x7] ss:$0 sm:$0xff] }
 0xeb2   :  { %v932_v23 = vld [vmem:[%s1398_s4 + $0x5] ss:$0 sm:$0xff] }
 0xeb3   :  { %1126 = vpow2.f32 %v930_v26 }
 0xebb   :  { %v1125_v25 = vpop.eup %1124 }
 0xebc   :  { %676 = vrot.lane.b32.xlu0 %v1125_v25, %s1151_s3 }
 0xebd   :  { %v1127_v5 = vpop.eup %1126 }
 0xebe   :  { %v670_v27 = vadd.f32 1.0, %v1127_v5 }
 0xec0   :  { %1128 = vrcp.f32 %v670_v27 }
 0xeca   :  { %v1129_v28 = vpop.eup %1128 }
 0xecb   :  { %v674_v6 = vmul.f32 %v1129_v28, %v597_v14 }
 0xf2e   :  { %v677_v29 = vpop.permute.xlu0 %676 }
 0xf2f   :  { %v679_v1 = vmul.f32 %v1129_v28, %v677_v29 }
 0xf31   :  { %681 = vrot.lane.b32.xlu1 %v679_v1, %s1151_s3 }
 0xfa3   :  { %v682_v30 = vpop.permute.xlu1 %681 }
 0xfa4   :  { %v684_v31 = vadd.f32 %v682_v30, %v674_v6 }
 0xfa6   :  { %1130 = vtanh.f32 %v684_v31 }
 0xfb0   :  { %v1131_v33 = vpop.eup %1130 }
 0xfb1   :  { %687 = vrot.lane.b32.xlu0 %v1131_v33, %s1151_s3 }
0x1023   :  { %v688_v34 = vpop.permute.xlu0 %687 }
0x1024   :  { %v1329_v35 = vmul.f32 %v1129_v28, %v688_v34 }
0x1026   :  { %v706_v36 = vpack.c.bf16 %v1329_v35, %v1329_v35 }
0x1028   :  { %708 = vrot.lane.b32.xlu1 %v706_v36, %s1152_s9 }
0x109a   :  { %v709_v37 = vpop.permute.xlu1 %708 }
0x109b   :  { %1060 = vmatmul.mubr.msk.bf16.vlgmr.msra.gmra.mrb[16].mxu0 %vm77_vm1, %v709_v37 }
0x116e   :  { %v747_v41 = vpop.f32.mrb[16].mxu0 }
0x116f   :  { %v753_v42 = vadd.f32 %v747_v41, %v705_v40  ;;  %v1061_v43 = vpop.f32.mrb[17].mxu0 }
0x1170   :  { %v750_v44 = vpop.f32.mrb[18].mxu0 }
0x1171   :  { %1132 = vtanh.f32 %v753_v42  ;;  %v1062_v45 = vpop.f32.mrb[19].mxu0  ;;  %v934_v47 = vmul.f32 -1.442695, %v753_v42 }
0x1173   :  { %1134 = vpow2.f32 %v934_v47 }
0x117b   :  { %v1133_v46 = vpop.eup %1132 }
0x117c   :  { %763 = vrot.lane.b32.xlu0 %v1133_v46, %s1151_s3 }
0x117d   :  { %v1135_v48 = vpop.eup %1134 }
0x117e   :  { %v757_v49 = vadd.f32 1.0, %v1135_v48 }
0x1180   :  { %1136 = vrcp.f32 %v757_v49 }
0x118a   :  { %v1137_v50 = vpop.eup %1136 }
0x118b   :  { %v761_v53 = vmul.f32 %v1137_v50, %v684_v31 }
0x11ee   :  { %v764_v51 = vpop.permute.xlu0 %763 }
0x11ef   :  { %v766_v52 = vmul.f32 %v1137_v50, %v764_v51 }
0x11f1   :  { %768 = vrot.lane.b32.xlu1 %v766_v52, %s1151_s3 }
0x1263   :  { %v769_v55 = vpop.permute.xlu1 %768 }
0x1264   :  { %v771_v56 = vadd.f32 %v769_v55, %v761_v53 }
0x1266   :  { %1138 = vtanh.f32 %v771_v56 }
0x1270   :  { %v1139_v57 = vpop.eup %1138 }
0x1271   :  { %774 = vrot.lane.b32.xlu0 %v1139_v57, %s1151_s3 }
0x12e3   :  { %v775_v58 = vpop.permute.xlu0 %774 }
0x12e4   :  { %v1338_v59 = vmul.f32 %v1137_v50, %v775_v58 }
0x12e6   :  { %v793_v60 = vpack.c.bf16 %v1338_v59, %v1338_v59 }
0x12e8   :  { %795 = vrot.lane.b32.xlu1 %v793_v60, %s1152_s9 }
0x135a   :  { %v796_v62 = vpop.permute.xlu1 %795 }
0x135b   :  { %1068 = vmatmul.mubr.msk.bf16.vlgmr.msra.gmra.mrb[16].mxu1 %vm77_vm1, %v796_v62 }
0x142e   :  { %v834_v0 = vpop.f32.mrb[16].mxu1 }
0x142f   :  { %v840_v2 = vadd.f32 %v834_v0, %v792_v63  ;;  %v1069_v3 = vpop.f32.mrb[17].mxu1 }
0x1430   :  { %v837_v4 = vpop.f32.mrb[18].mxu1 }
0x1431   :  { %1140 = vtanh.f32 %v840_v2  ;;  %v1070_v7 = vpop.f32.mrb[19].mxu1  ;;  %v938_v14 = vmul.f32 -1.442695, %v840_v2 }
0x1433   :  { %1142 = vpow2.f32 %v938_v14 }
0x143b   :  { %v1141_v8 = vpop.eup %1140 }
0x143c   :  { %850 = vrot.lane.b32.xlu0 %v1141_v8, %s1151_s3 }
0x143d   :  { %v1143_v9 = vpop.eup %1142 }
0x143e   :  { %v844_v15 = vadd.f32 1.0, %v1143_v9 }
0x1440   :  { %263 = vrot.lane.b32.xlu0 %v912_v10, %s1152_s9  ;;  %1144 = vrcp.f32 %v844_v15 }
0x1444   :  { %437 = vrot.lane.b32.xlu0 %v920_v11, %s1152_s9 }
0x1448   :  { %611 = vrot.lane.b32.xlu0 %v928_v12, %s1152_s9 }
0x144a   :  { %v1145_v17 = vpop.eup %1144 }
0x144b   :  { %v848_v24 = vmul.f32 %v1145_v17, %v771_v56 }
0x144c   :  { %785 = vrot.lane.b32.xlu0 %v936_v13, %s1152_s9 }
0x1450   :  { %872 = vrot.lane.b32.xlu0 %v940_v21, %s1152_s9 }
0x14ae   :  { %v851_v18 = vpop.permute.xlu0 %850 }
0x14af   :  { %v853_v19 = vmul.f32 %v1145_v17, %v851_v18 }
0x14b1   :  { %855 = vrot.lane.b32.xlu1 %v853_v19, %s1151_s3 }
0x14b2   :  { %v264_v27 = vpop.permute.xlu0 %263 }
0x14b3   :  { %v266_v1 = vmul.f32 %v264_v27, %v1242_v38  ;;  %v11_v38 = vstv %s1399_s5 }
0x14b4   :  { %12 = vst [vmem:[#allocation3] sm:$0x1] %v11_v38 }
0x14b5   :  { %350 = vrot.lane.b32.xlu1 %v916_v20, %s1152_s9 }
0x14b6   :  { %v438_v6 = vpop.permute.xlu0 %437 }
0x14b7   :  { %v440_v33 = vmul.f32 %v438_v6, %v1286_v32 }
0x14b9   :  { %524 = vrot.lane.b32.xlu1 %v924_v22, %s1152_s9 }
0x14ba   :  { %v612_v37 = vpop.permute.xlu0 %611 }
0x14bb   :  { %v614_v41 = vmul.f32 %v612_v37, %v1315_v16  ;;  %v941_v50 = vld [vmem:[#allocation3] ss:$0 sm:$0xff] }
0x14bd   :  { %698 = vrot.lane.b32.xlu1 %v932_v23, %s1152_s9 }
0x14be   :  { %v786_v44 = vpop.permute.xlu0 %785 }
0x14bf   :  { %v788_v46 = vmul.f32 %v786_v44, %v1338_v59 }
0x14c2   :  { %v873_v32 = vpop.permute.xlu0 %872 }
0x1523   :  { %v856_v25 = vpop.permute.xlu1 %855 }
0x1524   :  { %v858_v26 = vadd.f32 %v856_v25, %v848_v24 }
0x1526   :  { %1146 = vtanh.f32 %v858_v26 }
0x1527   :  { %v351_v28 = vpop.permute.xlu1 %350 }
0x1528   :  { %v353_v29 = vmul.f32 %v351_v28, %v1267_v61 }
0x152a   :  { %v354_v30 = vadd.f32 %v353_v29, %v266_v1 }
0x152b   :  { %v525_v31 = vpop.permute.xlu1 %524 }
0x152c   :  { %v441_v34 = vadd.f32 %v440_v33, %v354_v30  ;;  %v527_v36 = vmul.f32 %v525_v31, %v1301_v54 }
0x152e   :  { %v528_v39 = vadd.f32 %v527_v36, %v441_v34 }
0x152f   :  { %v699_v40 = vpop.permute.xlu1 %698 }
0x1530   :  { %v1147_v5 = vpop.eup %1146  ;;  %v615_v42 = vadd.f32 %v614_v41, %v528_v39  ;;  %v701_v43 = vmul.f32 %v699_v40, %v1329_v35 }
0x1531   :  { %861 = vrot.lane.b32.xlu1 %v1147_v5, %s1151_s3 }
0x1532   :  { %v702_v61 = vadd.f32 %v701_v43, %v615_v42 }
0x1534   :  { %v789_v47 = vadd.f32 %v788_v46, %v702_v61 }
0x15a3   :  { %v862_v45 = vpop.permute.xlu1 %861 }
0x15a4   :  { %v864_v54 = vmul.f32 %v1145_v17, %v862_v45 }
0x15a6   :  { %v875_v48 = vmul.f32 %v873_v32, %v864_v54 }
0x15a8   :  { %v876_v49 = vadd.f32 %v875_v48, %v789_v47 }
0x15aa   :  { %878 = vrot.lane.b32.xlu1 %v876_v49, %s1152_s9 }
0x161c   :  { %v879_v16 = vpop.permute.xlu1 %878 }
0x161d   :  { %v881_v35 = vsel %vm77_vm1, %v879_v16, 0.0 }
0x161e   :  { %882 = vadd.xlane.f32.xlu0 %v881_v35 }
0x16ab   :  { %v883_v51 = vpop.xlane.xlu0 %882 }
0x16ac   :  { %v891_v52 = vadd.f32 %v941_v50, %v883_v51 }
0x16ae   :  { %893 = vst.msk [vmem:[%s1400_s6] sm:$0xff] %vm892_vm2, %v891_v52 }

// kernel: lstm_model_forward.2
= control target key start
LH: loop header
LB: loop body
LE: loop exit
PB: predicated region body
PF: predicated region fallthrough
CT: control target
= control target key end

     0   :  { %vm61_vm0 = vcmask 130048   ;;  %v1081_v1 = vmov 0.0   ;;  %vm1082_vm1 = vmmov 0   ;;  %v1083_v6 = vmov 0   ;;  %s1085_s25 = smov 64   ;;  %s1303_s1 = inlined_call_operand.vmem [shape: bf16[16,128], index: 1, kind: input, shape index: {}]   ;;  %s1304_s0 = inlined_call_operand.vmem [shape: bf16[8,8,16], index: 0, kind: input, shape index: {}]   ;;  %s1305_s2 = inlined_call_operand.vmem [shape: bf16[32,128], index: 2, kind: input, shape index: {}]   ;;  %s1306_s3 = inlined_call_operand.vmem [shape: f32[1,128], index: 3, kind: input, shape index: {}]   ;;  %s1307_s4 = inlined_call_operand.vmem [shape: bf16[8,8,32], index: 4, kind: output, shape index: {}]  }
   0x1   :  { %v1010_v0 = vld [vmem:[%s1303_s1] sm:$0xff]   ;;  %941 = vmatprep.subr.bf16.mxu1 %v1081_v1  ;;  %945 = vmatprep.mubr.msk.bf16.mxu1 %vm1082_vm1, %v1081_v1  ;;  %v1012_v3 = vld [vmem:[%s1304_s0 + $0x8] sm:$0xff]   ;;  %vm173_vm2 = vcmask 261120   ;;  %v1015_v56 = vld [vmem:[%s1304_s0 + $0x10] sm:$0xff]   ;;  %vm249_vm3 = vcmask 257024  }
   0x2   :  { %v1011_v2 = vld [vmem:[%s1304_s0] sm:$0xff]   ;;  %931 = vmatprep.subr.bf16.mxu0 %v1010_v0  ;;  %v1132_v5 = vld [vmem:[%s1305_s2 + $0x8] sm:$0xff]   ;;  %v1016_v57 = vld [vmem:[%s1304_s0 + $0x18] sm:$0xff]  }
   0x3   :  { %932 = vmatpush3.bf16.msra.mxu0 %v1010_v0  ;;  %933 = vmatprep.mubr.msk.bf16.mxu0 %vm61_vm0, %v1011_v2  ;;  %v1127_v4 = vld [vmem:[%s1305_s2] sm:$0xff]  }
   0x4   :  { %957 = vmatprep.subr.bf16.mxu0 %v1081_v1  ;;  %942 = vmatpush3.bf16.msra.mxu1 %v1127_v4  ;;  %v1153_v8 = vld [vmem:[%s1306_s3] ss:$0 sm:$0xff]  ;;  %s1084_s3 = smov 32  }
   0x5   :  { %943 = vmatprep.subr.bf16.mxu1 %v1081_v1 }
   0x6   :  { %934 = vmatmul.mubr.msk.bf16.vlgmr.msra.gmra.mrb[0].mxu0 %vm61_vm0, %v1012_v3 }
   0x7   :  { %958 = vmatpush3.bf16.msra.mxu0 %v1127_v4  ;;  %937 = vmatprep.mubr.msk.bf16.mxu0 %vm61_vm0, %v1015_v56 }
   0x8   :  { %959 = vmatprep.subr.bf16.mxu0 %v1081_v1  ;;  %944 = vmatpush3.bf16.msra.mxu1 %v1132_v5 }
   0x9   :  { %949 = vmatprep.subr.bf16.mxu1 %v1081_v1 }
   0xb   :  { %960 = vmatpush3.bf16.msra.mxu0 %v1132_v5  ;;  %946 = vmatmul.mubr.bf16.vlgmr.msra.gmra.mrb[0].mxu1 %v1083_v6 }
   0xc   :  { %973 = vmatprep.subr.bf16.mxu0 %v1081_v1  ;;  %950 = vmatpush3.bf16.msra.mxu1 %v1127_v4 }
   0xd   :  { %953 = vmatprep.mubr.msk.bf16.mxu1 %vm1082_vm1, %v1081_v1  ;;  %951 = vmatprep.subr.bf16.mxu1 %v1081_v1 }
   0xe   :  { %938 = vmatmul.mubr.msk.bf16.gmra.mrb[4].mxu0 %vm61_vm0, %v1016_v57 }
   0xf   :  { %961 = vmatprep.mubr.msk.bf16.mxu0 %vm1082_vm1, %v1081_v1 }
  0x10   :  { %952 = vmatpush3.bf16.msra.mxu1 %v1132_v5 }
  0x11   :  { %965 = vmatprep.subr.bf16.mxu1 %v1081_v1 }
  0xd9   :  { %v935_v7 = vpop.f32.mrb[0].mxu0 }
  0xda   :  { %v108_v9 = vpop.f32.mrb[1].mxu0  ;;  %v117_v11 = vadd.f32 %v935_v7, %v1153_v8 }
  0xdb   :  { %v936_v10 = vpop.f32.mrb[2].mxu0  ;;  %v109_v14 = vadd.f32 %v1153_v8, %v108_v9 }
  0xdc   :  { %v120_v12 = vadd.f32 %v936_v10, %v1153_v8  ;;  %v111_v13 = vpop.f32.mrb[3].mxu0 }
  0xdd   :  { %v112_v15 = vadd.f32 %v1153_v8, %v111_v13 }
  0xde   :  { %v887_v16 = vpack.c.bf16 %v120_v12, %v117_v11  ;;  %v211_v18 = vpop.f32.mrb[0].mxu1 }
  0xdf   :  { %v882_v17 = vpack.c.bf16 %v112_v15, %v109_v14  ;;  %v947_v19 = vpop.f32.mrb[1].mxu1 }
  0xe0   :  { %899 = vst [vmem:[#allocation2 + $0x8] sm:$0xff] %v887_v16   ;;  %v214_v20 = vpop.f32.mrb[2].mxu1 }
  0xe1   :  { %883 = vst [vmem:[#allocation2] sm:$0xff] %v882_v17   ;;  %v948_v21 = vpop.f32.mrb[3].mxu1  ;;  %v939_v62 = vpop.f32.mrb[4].mxu0 }
  0xe2   :  { %v133_v63 = vadd.f32 %v939_v62, %v1153_v8  ;;  %v124_v0 = vpop.f32.mrb[5].mxu0 }
  0xe3   :  { %v125_v2 = vadd.f32 %v1153_v8, %v124_v0  ;;  %v940_v3 = vpop.f32.mrb[6].mxu0 }
  0xe4   :  { %v136_v6 = vadd.f32 %v940_v3, %v1153_v8  ;;  %v127_v7 = vpop.f32.mrb[7].mxu0 }
  0xe5   :  { %v128_v9 = vadd.f32 %v1153_v8, %v127_v7 }
  0xe6   :  { %v897_v10 = vpack.c.bf16 %v136_v6, %v133_v63 }
  0xe7   :  { %v892_v11 = vpack.c.bf16 %v128_v9, %v125_v2  ;;  %v334_v13 = vld [vmem:[#allocation2 + $0x8] sm:$0xff]  }
  0xe8   :  { %v159_v22 = vld [vmem:[#allocation2] sm:$0xff]   ;;  %901 = vst [vmem:[#allocation2 + $0x18] sm:$0xff] %v897_v10   ;;  %v335_v8 = vunpack.c.l.bf16 %v334_v13 }
  0xe9   :  { %v160_v23 = vunpack.c.l.bf16 %v159_v22  ;;  %v253_v40 = vunpack.c.h.bf16 %v159_v22  ;;  %900 = vst [vmem:[#allocation2 + $0x10] sm:$0xff] %v892_v11  }
  0xeb   :  { %v217_v24 = vadd.f32 %v211_v18, %v160_v23 }
  0xed   :  { %1017 = vtanh.f32 %v217_v24  ;;  %v841_v26 = vmul.f32 -1.442695, %v217_v24 }
  0xef   :  { %1019 = vpow2.f32 %v841_v26 }
  0xf0   :  { %v498_v56 = vld [vmem:[#allocation2 + $0x10] sm:$0xff]  }
  0xf1   :  { %v499_v57 = vunpack.c.l.bf16 %v498_v56 }
  0xf7   :  { %v1018_v25 = vpop.eup %1017 }
  0xf8   :  { %227 = vrot.lane.b32.xlu0 %v1018_v25, %s1084_s3 }
  0xf9   :  { %v1020_v27 = vpop.eup %1019 }
  0xfa   :  { %v221_v28 = vadd.f32 1.0, %v1020_v27 }
  0xfc   :  { %1021 = vrcp.f32 %v221_v28 }
 0x106   :  { %v1022_v29 = vpop.eup %1021 }
 0x107   :  { %v225_v32 = vmul.f32 0.0, %v1022_v29 }
 0x16a   :  { %v228_v30 = vpop.permute.xlu0 %227 }
 0x16b   :  { %v230_v31 = vmul.f32 %v1022_v29, %v228_v30 }
 0x16d   :  { %232 = vrot.lane.b32.xlu0 %v230_v31, %s1084_s3 }
 0x1df   :  { %v233_v33 = vpop.permute.xlu0 %232 }
 0x1e0   :  { %v235_v34 = vadd.f32 %v233_v33, %v225_v32 }
 0x1e2   :  { %1023 = vtanh.f32 %v235_v34 }
 0x1ec   :  { %v1024_v35 = vpop.eup %1023 }
 0x1ed   :  { %238 = vrot.lane.b32.xlu1 %v1024_v35, %s1084_s3 }
 0x25f   :  { %v239_v36 = vpop.permute.xlu1 %238 }
 0x260   :  { %v241_v37 = vmul.f32 %v1022_v29, %v239_v36 }
 0x262   :  { %v1162_v38 = vpack.c.bf16 %v241_v37, %v241_v37 }
 0x264   :  { %254 = vrot.lane.b32.xlu1 %v1162_v38, %s1085_s25 }
 0x2d6   :  { %v255_v39 = vpop.permute.xlu1 %254 }
 0x2d7   :  { %954 = vmatmul.mubr.msk.bf16.vlgmr.msra.gmra.mrb[4].mxu1 %vm173_vm2, %v255_v39 }
 0x2d8   :  { %966 = vmatpush3.bf16.msra.mxu1 %v1127_v4  ;;  %969 = vmatprep.mubr.msk.bf16.mxu1 %vm1082_vm1, %v1081_v1 }
 0x2d9   :  { %967 = vmatprep.subr.bf16.mxu1 %v1081_v1 }
 0x2dc   :  { %968 = vmatpush3.bf16.msra.mxu1 %v1132_v5 }
 0x2dd   :  { %981 = vmatprep.subr.bf16.mxu1 %v1081_v1 }
 0x3aa   :  { %v293_v41 = vpop.f32.mrb[4].mxu1 }
 0x3ab   :  { %v299_v42 = vadd.f32 %v293_v41, %v253_v40  ;;  %v955_v43 = vpop.f32.mrb[5].mxu1 }
 0x3ac   :  { %v296_v44 = vpop.f32.mrb[6].mxu1 }
 0x3ad   :  { %1025 = vtanh.f32 %v299_v42  ;;  %v956_v45 = vpop.f32.mrb[7].mxu1  ;;  %v844_v47 = vmul.f32 -1.442695, %v299_v42 }
 0x3af   :  { %1027 = vpow2.f32 %v844_v47 }
 0x3b7   :  { %v1026_v46 = vpop.eup %1025 }
 0x3b8   :  { %309 = vrot.lane.b32.xlu0 %v1026_v46, %s1084_s3 }
 0x3b9   :  { %v1028_v48 = vpop.eup %1027 }
 0x3ba   :  { %v303_v49 = vadd.f32 1.0, %v1028_v48 }
 0x3bc   :  { %1029 = vrcp.f32 %v303_v49 }
 0x3c6   :  { %v1030_v50 = vpop.eup %1029 }
 0x3c7   :  { %v307_v53 = vmul.f32 %v1030_v50, %v235_v34  ;;  %v417_v34 = vunpack.c.h.bf16 %v334_v13 }
 0x42a   :  { %v310_v51 = vpop.permute.xlu0 %309 }
 0x42b   :  { %v312_v52 = vmul.f32 %v1030_v50, %v310_v51 }
 0x42d   :  { %314 = vrot.lane.b32.xlu1 %v312_v52, %s1084_s3 }
 0x49f   :  { %v315_v54 = vpop.permute.xlu1 %314 }
 0x4a0   :  { %v317_v55 = vadd.f32 %v315_v54, %v307_v53 }
 0x4a2   :  { %1031 = vtanh.f32 %v317_v55 }
 0x4ac   :  { %v1032_v58 = vpop.eup %1031 }
 0x4ad   :  { %320 = vrot.lane.b32.xlu0 %v1032_v58, %s1084_s3 }
 0x51f   :  { %v321_v59 = vpop.permute.xlu0 %320 }
 0x520   :  { %v323_v60 = vmul.f32 %v1030_v50, %v321_v59 }
 0x522   :  { %v1186_v61 = vpack.c.bf16 %v323_v60, %v323_v60 }
 0x524   :  { %336 = vrot.lane.b32.xlu1 %v1186_v61, %s1085_s25 }
 0x596   :  { %v337_v12 = vpop.permute.xlu1 %336 }
 0x597   :  { %962 = vmatmul.mubr.msk.bf16.vlgmr.msra.gmra.mrb[8].mxu0 %vm173_vm2, %v337_v12 }
 0x598   :  { %974 = vmatpush3.bf16.msra.mxu0 %v1127_v4  ;;  %977 = vmatprep.mubr.msk.bf16.mxu0 %vm1082_vm1, %v1081_v1 }
 0x599   :  { %975 = vmatprep.subr.bf16.mxu0 %v1081_v1 }
 0x59c   :  { %976 = vmatpush3.bf16.msra.mxu0 %v1132_v5 }
 0x59d   :  { %989 = vmatprep.subr.bf16.mxu0 %v1081_v1 }
 0x66a   :  { %v375_v14 = vpop.f32.mrb[8].mxu0 }
 0x66b   :  { %v381_v15 = vadd.f32 %v375_v14, %v335_v8  ;;  %v963_v16 = vpop.f32.mrb[9].mxu0 }
 0x66c   :  { %v378_v17 = vpop.f32.mrb[10].mxu0 }
 0x66d   :  { %1033 = vtanh.f32 %v381_v15  ;;  %v964_v18 = vpop.f32.mrb[11].mxu0  ;;  %v848_v20 = vmul.f32 -1.442695, %v381_v15 }
 0x66e   :  { %v581_v18 = vunpack.c.h.bf16 %v498_v56 }
 0x66f   :  { %1035 = vpow2.f32 %v848_v20 }
 0x677   :  { %v1034_v19 = vpop.eup %1033 }
 0x678   :  { %391 = vrot.lane.b32.xlu0 %v1034_v19, %s1084_s3 }
 0x679   :  { %v1036_v21 = vpop.eup %1035 }
 0x67a   :  { %v385_v22 = vadd.f32 1.0, %v1036_v21 }
 0x67c   :  { %1037 = vrcp.f32 %v385_v22 }
 0x686   :  { %v1038_v23 = vpop.eup %1037 }
 0x687   :  { %v389_v26 = vmul.f32 %v1038_v23, %v317_v55 }
 0x6ea   :  { %v392_v24 = vpop.permute.xlu0 %391 }
 0x6eb   :  { %v394_v25 = vmul.f32 %v1038_v23, %v392_v24 }
 0x6ed   :  { %396 = vrot.lane.b32.xlu1 %v394_v25, %s1084_s3 }
 0x75f   :  { %v397_v27 = vpop.permute.xlu1 %396 }
 0x760   :  { %v399_v28 = vadd.f32 %v397_v27, %v389_v26 }
 0x762   :  { %1039 = vtanh.f32 %v399_v28 }
 0x76c   :  { %v1040_v29 = vpop.eup %1039 }
 0x76d   :  { %402 = vrot.lane.b32.xlu0 %v1040_v29, %s1084_s3 }
 0x7df   :  { %v403_v30 = vpop.permute.xlu0 %402 }
 0x7e0   :  { %v405_v31 = vmul.f32 %v1038_v23, %v403_v30 }
 0x7e2   :  { %v1204_v32 = vpack.c.bf16 %v405_v31, %v405_v31 }
 0x7e4   :  { %418 = vrot.lane.b32.xlu1 %v1204_v32, %s1085_s25 }
 0x856   :  { %v419_v33 = vpop.permute.xlu1 %418 }
 0x857   :  { %970 = vmatmul.mubr.msk.bf16.vlgmr.msra.gmra.mrb[8].mxu1 %vm173_vm2, %v419_v33 }
 0x858   :  { %982 = vmatpush3.bf16.msra.mxu1 %v1127_v4  ;;  %985 = vmatprep.mubr.msk.bf16.mxu1 %vm1082_vm1, %v1081_v1 }
 0x859   :  { %983 = vmatprep.subr.bf16.mxu1 %v1081_v1 }
 0x85c   :  { %984 = vmatpush3.bf16.msra.mxu1 %v1132_v5 }
 0x85d   :  { %997 = vmatprep.subr.bf16.mxu1 %v1081_v1 }
 0x92a   :  { %v457_v35 = vpop.f32.mrb[8].mxu1 }
 0x92b   :  { %v463_v36 = vadd.f32 %v457_v35, %v417_v34  ;;  %v971_v37 = vpop.f32.mrb[9].mxu1 }
 0x92c   :  { %v460_v39 = vpop.f32.mrb[10].mxu1  ;;  %v662_v37 = vld [vmem:[#allocation2 + $0x18] sm:$0xff]  }
 0x92d   :  { %1041 = vtanh.f32 %v463_v36  ;;  %v972_v40 = vpop.f32.mrb[11].mxu1  ;;  %v852_v42 = vmul.f32 -1.442695, %v463_v36  ;;  %v663_v39 = vunpack.c.l.bf16 %v662_v37 }
 0x92f   :  { %1043 = vpow2.f32 %v852_v42 }
 0x937   :  { %v1042_v41 = vpop.eup %1041 }
 0x938   :  { %473 = vrot.lane.b32.xlu0 %v1042_v41, %s1084_s3 }
 0x939   :  { %v1044_v43 = vpop.eup %1043 }
 0x93a   :  { %v467_v44 = vadd.f32 1.0, %v1044_v43 }
 0x93c   :  { %1045 = vrcp.f32 %v467_v44 }
 0x946   :  { %v1046_v45 = vpop.eup %1045 }
 0x947   :  { %v471_v48 = vmul.f32 %v1046_v45, %v399_v28 }
 0x9aa   :  { %v474_v46 = vpop.permute.xlu0 %473 }
 0x9ab   :  { %v476_v47 = vmul.f32 %v1046_v45, %v474_v46 }
 0x9ad   :  { %478 = vrot.lane.b32.xlu1 %v476_v47, %s1084_s3 }
 0xa1f   :  { %v479_v49 = vpop.permute.xlu1 %478 }
 0xa20   :  { %v481_v50 = vadd.f32 %v479_v49, %v471_v48 }
 0xa22   :  { %1047 = vtanh.f32 %v481_v50 }
 0xa2c   :  { %v1048_v51 = vpop.eup %1047 }
 0xa2d   :  { %484 = vrot.lane.b32.xlu0 %v1048_v51, %s1084_s3 }
 0xa9f   :  { %v485_v52 = vpop.permute.xlu0 %484 }
 0xaa0   :  { %v487_v53 = vmul.f32 %v1046_v45, %v485_v52 }
 0xaa2   :  { %v1218_v54 = vpack.c.bf16 %v487_v53, %v487_v53 }
 0xaa4   :  { %500 = vrot.lane.b32.xlu1 %v1218_v54, %s1085_s25 }
 0xb16   :  { %v501_v55 = vpop.permute.xlu1 %500 }
 0xb17   :  { %978 = vmatmul.mubr.msk.bf16.vlgmr.msra.gmra.mrb[12].mxu0 %vm173_vm2, %v501_v55 }
 0xb18   :  { %990 = vmatpush3.bf16.msra.mxu0 %v1127_v4  ;;  %993 = vmatprep.mubr.msk.bf16.mxu0 %vm1082_vm1, %v1081_v1 }
 0xb19   :  { %991 = vmatprep.subr.bf16.mxu0 %v1081_v1 }
 0xb1c   :  { %992 = vmatpush3.bf16.msra.mxu0 %v1132_v5 }
 0xbea   :  { %v539_v58 = vpop.f32.mrb[12].mxu0 }
 0xbeb   :  { %v545_v59 = vadd.f32 %v539_v58, %v499_v57  ;;  %v979_v60 = vpop.f32.mrb[13].mxu0 }
 0xbec   :  { %v542_v62 = vpop.f32.mrb[14].mxu0 }
 0xbed   :  { %1049 = vtanh.f32 %v545_v59  ;;  %v980_v63 = vpop.f32.mrb[15].mxu0  ;;  %v856_v2 = vmul.f32 -1.442695, %v545_v59  ;;  %v745_v62 = vunpack.c.h.bf16 %v662_v37 }
 0xbef   :  { %1051 = vpow2.f32 %v856_v2 }
 0xbf7   :  { %v1050_v0 = vpop.eup %1049 }
 0xbf8   :  { %555 = vrot.lane.b32.xlu0 %v1050_v0, %s1084_s3 }
 0xbf9   :  { %v1052_v3 = vpop.eup %1051 }
 0xbfa   :  { %v549_v6 = vadd.f32 1.0, %v1052_v3 }
 0xbfc   :  { %1053 = vrcp.f32 %v549_v6 }
 0xc06   :  { %v1054_v7 = vpop.eup %1053 }
 0xc07   :  { %v553_v11 = vmul.f32 %v1054_v7, %v481_v50 }
 0xc6a   :  { %v556_v9 = vpop.permute.xlu0 %555 }
 0xc6b   :  { %v558_v10 = vmul.f32 %v1054_v7, %v556_v9 }
 0xc6d   :  { %560 = vrot.lane.b32.xlu1 %v558_v10, %s1084_s3 }
 0xcdf   :  { %v561_v12 = vpop.permute.xlu1 %560 }
 0xce0   :  { %v563_v13 = vadd.f32 %v561_v12, %v553_v11 }
 0xce2   :  { %1055 = vtanh.f32 %v563_v13 }
 0xcec   :  { %v1056_v8 = vpop.eup %1055 }
 0xced   :  { %566 = vrot.lane.b32.xlu0 %v1056_v8, %s1084_s3 }
 0xd5f   :  { %v567_v14 = vpop.permute.xlu0 %566 }
 0xd60   :  { %v569_v15 = vmul.f32 %v1054_v7, %v567_v14 }
 0xd62   :  { %v1231_v16 = vpack.c.bf16 %v569_v15, %v569_v15 }
 0xd64   :  { %582 = vrot.lane.b32.xlu1 %v1231_v16, %s1085_s25 }
 0xdd6   :  { %v583_v17 = vpop.permute.xlu1 %582 }
 0xdd7   :  { %986 = vmatmul.mubr.msk.bf16.vlgmr.msra.gmra.mrb[12].mxu1 %vm173_vm2, %v583_v17 }
 0xdd8   :  { %998 = vmatpush3.bf16.msra.mxu1 %v1127_v4  ;;  %1001 = vmatprep.mubr.msk.bf16.mxu1 %vm1082_vm1, %v1081_v1 }
 0xdd9   :  { %999 = vmatprep.subr.bf16.mxu1 %v1081_v1 }
 0xddc   :  { %1000 = vmatpush3.bf16.msra.mxu1 %v1132_v5 }
 0xeaa   :  { %v621_v19 = vpop.f32.mrb[12].mxu1 }
 0xeab   :  { %v627_v20 = vadd.f32 %v621_v19, %v581_v18  ;;  %v987_v21 = vpop.f32.mrb[13].mxu1 }
 0xeac   :  { %v624_v22 = vpop.f32.mrb[14].mxu1 }
 0xead   :  { %1057 = vtanh.f32 %v627_v20  ;;  %v988_v23 = vpop.f32.mrb[15].mxu1  ;;  %v860_v25 = vmul.f32 -1.442695, %v627_v20 }
 0xeaf   :  { %1059 = vpow2.f32 %v860_v25 }
 0xeb7   :  { %v1058_v24 = vpop.eup %1057 }
 0xeb8   :  { %637 = vrot.lane.b32.xlu0 %v1058_v24, %s1084_s3 }
 0xeb9   :  { %v1060_v4 = vpop.eup %1059 }
 0xeba   :  { %v631_v26 = vadd.f32 1.0, %v1060_v4 }
 0xebc   :  { %1061 = vrcp.f32 %v631_v26 }
 0xec6   :  { %v1062_v27 = vpop.eup %1061 }
 0xec7   :  { %v635_v5 = vmul.f32 %v1062_v27, %v563_v13 }
 0xf2a   :  { %v638_v28 = vpop.permute.xlu0 %637 }
 0xf2b   :  { %v640_v1 = vmul.f32 %v1062_v27, %v638_v28 }
 0xf2d   :  { %642 = vrot.lane.b32.xlu1 %v640_v1, %s1084_s3 }
 0xf9f   :  { %v643_v29 = vpop.permute.xlu1 %642 }
 0xfa0   :  { %v645_v30 = vadd.f32 %v643_v29, %v635_v5 }
 0xfa2   :  { %1063 = vtanh.f32 %v645_v30 }
 0xfac   :  { %v1064_v31 = vpop.eup %1063 }
 0xfad   :  { %648 = vrot.lane.b32.xlu0 %v1064_v31, %s1084_s3 }
0x101f   :  { %v649_v33 = vpop.permute.xlu0 %648 }
0x1020   :  { %v651_v34 = vmul.f32 %v1062_v27, %v649_v33 }
0x1022   :  { %v1244_v35 = vpack.c.bf16 %v651_v34, %v651_v34 }
0x1024   :  { %664 = vrot.lane.b32.xlu1 %v1244_v35, %s1085_s25 }
0x1096   :  { %v665_v36 = vpop.permute.xlu1 %664 }
0x1097   :  { %994 = vmatmul.mubr.msk.bf16.vlgmr.msra.gmra.mrb[16].mxu0 %vm173_vm2, %v665_v36 }
0x116a   :  { %v703_v40 = vpop.f32.mrb[16].mxu0 }
0x116b   :  { %v709_v41 = vadd.f32 %v703_v40, %v663_v39  ;;  %v995_v42 = vpop.f32.mrb[17].mxu0 }
0x116c   :  { %v706_v43 = vpop.f32.mrb[18].mxu0 }
0x116d   :  { %1065 = vtanh.f32 %v709_v41  ;;  %v996_v44 = vpop.f32.mrb[19].mxu0  ;;  %v864_v46 = vmul.f32 -1.442695, %v709_v41 }
0x116f   :  { %1067 = vpow2.f32 %v864_v46 }
0x1177   :  { %v1066_v45 = vpop.eup %1065 }
0x1178   :  { %719 = vrot.lane.b32.xlu0 %v1066_v45, %s1084_s3 }
0x1179   :  { %v1068_v47 = vpop.eup %1067 }
0x117a   :  { %v713_v48 = vadd.f32 1.0, %v1068_v47 }
0x117c   :  { %1069 = vrcp.f32 %v713_v48 }
0x1186   :  { %v1070_v49 = vpop.eup %1069 }
0x1187   :  { %v717_v52 = vmul.f32 %v1070_v49, %v645_v30 }
0x11ea   :  { %v720_v50 = vpop.permute.xlu0 %719 }
0x11eb   :  { %v722_v51 = vmul.f32 %v1070_v49, %v720_v50 }
0x11ed   :  { %724 = vrot.lane.b32.xlu1 %v722_v51, %s1084_s3 }
0x125f   :  { %v725_v53 = vpop.permute.xlu1 %724 }
0x1260   :  { %v727_v55 = vadd.f32 %v725_v53, %v717_v52 }
0x1262   :  { %1071 = vtanh.f32 %v727_v55 }
0x126c   :  { %v1072_v56 = vpop.eup %1071 }
0x126d   :  { %730 = vrot.lane.b32.xlu0 %v1072_v56, %s1084_s3 }
0x12df   :  { %v731_v57 = vpop.permute.xlu0 %730 }
0x12e0   :  { %v733_v58 = vmul.f32 %v1070_v49, %v731_v57 }
0x12e2   :  { %v734_v59 = vpack.c.bf16 %v733_v58, %v733_v58 }
0x12e4   :  { %746 = vrot.lane.b32.xlu1 %v734_v59, %s1085_s25 }
0x1356   :  { %v747_v60 = vpop.permute.xlu1 %746 }
0x1357   :  { %1002 = vmatmul.mubr.msk.bf16.vlgmr.msra.gmra.mrb[16].mxu1 %vm173_vm2, %v747_v60 }
0x142a   :  { %v785_v63 = vpop.f32.mrb[16].mxu1 }
0x142b   :  { %v791_v0 = vadd.f32 %v785_v63, %v745_v62  ;;  %v1003_v2 = vpop.f32.mrb[17].mxu1 }
0x142c   :  { %v788_v3 = vpop.f32.mrb[18].mxu1 }
0x142d   :  { %1073 = vtanh.f32 %v791_v0  ;;  %v1004_v6 = vpop.f32.mrb[19].mxu1  ;;  %v868_v9 = vmul.f32 -1.442695, %v791_v0 }
0x142f   :  { %1075 = vpow2.f32 %v868_v9 }
0x1437   :  { %v1074_v7 = vpop.eup %1073 }
0x1438   :  { %801 = vrot.lane.b32.xlu0 %v1074_v7, %s1084_s3 }
0x1439   :  { %v1076_v10 = vpop.eup %1075 }
0x143a   :  { %v795_v11 = vadd.f32 1.0, %v1076_v10 }
0x143c   :  { %1077 = vrcp.f32 %v795_v11 }
0x1446   :  { %v1078_v12 = vpop.eup %1077 }
0x1447   :  { %v799_v14 = vmul.f32 %v1078_v12, %v727_v55 }
0x14aa   :  { %v802_v13 = vpop.permute.xlu0 %801 }
0x14ab   :  { %v804_v8 = vmul.f32 %v1078_v12, %v802_v13 }
0x14ad   :  { %806 = vrot.lane.b32.xlu1 %v804_v8, %s1084_s3 }
0x14b1   :  { %246 = vrot.lane.b32.xlu1 %v1162_v38, %s1085_s25 }
0x14b5   :  { %410 = vrot.lane.b32.xlu1 %v1204_v32, %s1085_s25 }
0x14b9   :  { %574 = vrot.lane.b32.xlu1 %v1231_v16, %s1085_s25 }
0x14bd   :  { %738 = vrot.lane.b32.xlu1 %v734_v59, %s1085_s25 }
0x151f   :  { %v807_v15 = vpop.permute.xlu1 %806 }
0x1520   :  { %v809_v17 = vadd.f32 %v807_v15, %v799_v14 }
0x1522   :  { %1079 = vtanh.f32 %v809_v17 }
0x1523   :  { %v247_v18 = vpop.permute.xlu1 %246 }
0x1524   :  { %250 = vst.msk [vmem:[%s1307_s4] sm:$0xf] %vm249_vm3, %v247_v18 }
0x1527   :  { %v411_v38 = vpop.permute.xlu1 %410 }
0x1528   :  { %850 = vst.msk [vmem:[%s1307_s4 + $0x8] sm:$0xf] %vm249_vm3, %v411_v38 }
0x152b   :  { %v575_v32 = vpop.permute.xlu1 %574 }
0x152c   :  { %v1080_v16 = vpop.eup %1079  ;;  %858 = vst.msk [vmem:[%s1307_s4 + $0x10] sm:$0xf] %vm249_vm3, %v575_v32 }
0x152d   :  { %812 = vrot.lane.b32.xlu0 %v1080_v16, %s1084_s3 }
0x152f   :  { %v739_v19 = vpop.permute.xlu1 %738 }
0x1530   :  { %866 = vst.msk [vmem:[%s1307_s4 + $0x18] sm:$0xf] %vm249_vm3, %v739_v19 }
0x1531   :  { %328 = vrot.lane.b32.xlu0 %v1186_v61, %s1085_s25 }
0x1535   :  { %492 = vrot.lane.b32.xlu0 %v1218_v54, %s1085_s25 }
0x1539   :  { %656 = vrot.lane.b32.xlu0 %v1244_v35, %s1085_s25 }
0x159f   :  { %v813_v20 = vpop.permute.xlu0 %812 }
0x15a0   :  { %v815_v21 = vmul.f32 %v1078_v12, %v813_v20 }
0x15a2   :  { %v878_v22 = vpack.c.bf16 %v815_v21, %v815_v21 }
0x15a3   :  { %v329_v23 = vpop.permute.xlu0 %328 }
0x15a4   :  { %846 = vst.msk [vmem:[%s1307_s4 + $0x4] sm:$0xf] %vm249_vm3, %v329_v23  ;;  %820 = vrot.lane.b32.xlu0 %v878_v22, %s1085_s25 }
0x15a7   :  { %v493_v24 = vpop.permute.xlu0 %492 }
0x15a8   :  { %854 = vst.msk [vmem:[%s1307_s4 + $0xc] sm:$0xf] %vm249_vm3, %v493_v24 }
0x15ab   :  { %v657_v61 = vpop.permute.xlu0 %656 }
0x15ac   :  { %862 = vst.msk [vmem:[%s1307_s4 + $0x14] sm:$0xf] %vm249_vm3, %v657_v61 }
0x1616   :  { %v821_v54 = vpop.permute.xlu0 %820 }
0x1617   :  { %870 = vst.msk [vmem:[%s1307_s4 + $0x1c] sm:$0xf] %vm249_vm3, %v821_v54 }

</bundles_post_ra>
